<compile_context>
chip_gen: v7x
topology: tpu7x:2x2x1
jax: 0.10.0
libtpu: 0.0.40
codegen_flags: <defaults>
</compile_context>

<pallas_src>
import math
from functools import partial

import jax
import jax.numpy as jnp
from jax import lax
from jax.experimental import pallas as pl
from jax.experimental.pallas import tpu as pltpu


# ---------------------------------------------------------------------------
# Fused decoder-layer kernel
# ---------------------------------------------------------------------------

def _mha_core(q, k, v, attn_scratch, *, N, Lq, Lk, H, Dh):
    """Scaled-dot-product attention per (batch, head); scale already folded into q.

    q: (N*Lq, E) f32, k/v: (N*Lk, E) f32 (batch-major rows).  Per-head outputs
    are gathered in the VMEM scratch (N*Lq, E) and returned as a value.
    """
    bf16 = jnp.bfloat16
    for n in range(N):
        q_n = q[n * Lq:(n + 1) * Lq, :]
        k_n = k[n * Lk:(n + 1) * Lk, :]
        v_n = v[n * Lk:(n + 1) * Lk, :]
        for h in range(H):
            lo, hi = h * Dh, (h + 1) * Dh
            q_nh = q_n[:, lo:hi].astype(bf16)
            k_nh = k_n[:, lo:hi].astype(bf16)
            # scores = q @ k^T expressed as an NT dot_general (no in-kernel transpose)
            s = lax.dot_general(q_nh, k_nh,
                                dimension_numbers=(((1,), (1,)), ((), ())),
                                preferred_element_type=jnp.float32)
            s = s - jnp.max(s, axis=-1, keepdims=True)
            p = jnp.exp(s)
            p = p * pl.reciprocal(jnp.sum(p, axis=-1, keepdims=True), approx=True)
            o = jnp.dot(p.astype(bf16), v_n[:, lo:hi].astype(bf16),
                        preferred_element_type=jnp.float32)
            attn_scratch[n * Lq:(n + 1) * Lq, lo:hi] = o
    return attn_scratch[...]


def _decoder_layer_kernel(
    # activations (batch-major flattened)
    tgt_ref, mem_ref, qpos_ref, mpos_ref,
    # self-attention weights (packed q/k, then v, then out-proj)
    sa_wqk_ref, sa_bqk_ref, sa_wv_ref, sa_bv_ref, sa_wo_ref, sa_bo_ref,
    # cross-attention weights
    ca_wq_ref, ca_bq_ref, ca_wk_ref, ca_bk_ref, ca_wv_ref, ca_bv_ref,
    ca_wo_ref, ca_bo_ref,
    # feed-forward weights
    w1_ref, b1_ref, w2_ref, b2_ref,
    # layer norms
    n1w_ref, n1b_ref, n2w_ref, n2b_ref, n3w_ref, n3b_ref,
    # output
    out_ref,
    # scratch
    attn_scratch,
    *, N, Lq, Lk, H, Dh,
):
    E = H * Dh
    scale = 1.0 / math.sqrt(Dh)
    f32 = jnp.float32
    bf16 = jnp.bfloat16

    def matmul(x, w_ref):
        # x: (M, K) f32; w_ref: (K, Nout) bf16 (pre-transposed in the wrapper).
        return jnp.dot(x.astype(bf16), w_ref[...], preferred_element_type=f32)

    def layer_norm(x, g_ref, b_ref):
        mu = jnp.mean(x, axis=-1, keepdims=True)
        var = jnp.mean(jnp.square(x - mu), axis=-1, keepdims=True)
        return (x - mu) * lax.rsqrt(var + 1e-5) * g_ref[...] + b_ref[...]

    x = tgt_ref[...].astype(f32)        # (N*Lq, E)
    mem = mem_ref[...].astype(f32)      # (N*Lk, E)
    qpos = qpos_ref[...].astype(f32)
    mpos = mpos_ref[...].astype(f32)

    # ---------------- self attention (q = k = tgt + query_pos, v = tgt) -------
    qk_in = x + qpos
    qk = matmul(qk_in, sa_wqk_ref) + sa_bqk_ref[...]          # (M, 2E)
    q = qk[:, :E] * scale
    k = qk[:, E:]
    v = matmul(x, sa_wv_ref) + sa_bv_ref[...]
    attn = _mha_core(q, k, v, attn_scratch, N=N, Lq=Lq, Lk=Lq, H=H, Dh=Dh)
    x = layer_norm(x + matmul(attn, sa_wo_ref) + sa_bo_ref[...], n1w_ref, n1b_ref)

    # ---------------- cross attention (q = tgt+qpos, k = mem+pos, v = mem) ----
    q = (matmul(x + qpos, ca_wq_ref) + ca_bq_ref[...]) * scale
    k = matmul(mem + mpos, ca_wk_ref) + ca_bk_ref[...]
    v = matmul(mem, ca_wv_ref) + ca_bv_ref[...]
    attn = _mha_core(q, k, v, attn_scratch, N=N, Lq=Lq, Lk=Lk, H=H, Dh=Dh)
    x = layer_norm(x + matmul(attn, ca_wo_ref) + ca_bo_ref[...], n2w_ref, n2b_ref)

    # ---------------- feed forward --------------------------------------------
    h = jnp.maximum(matmul(x, w1_ref) + b1_ref[...], 0.0)
    y = matmul(h, w2_ref) + b2_ref[...]
    x = layer_norm(x + y, n3w_ref, n3b_ref)

    out_ref[...] = x.astype(out_ref.dtype)


# ---------------------------------------------------------------------------
# Wrapper: layout plumbing + single pallas_call
# ---------------------------------------------------------------------------

def transformer_decoder_layer(tgt, memory, params, pos=None, query_pos=None, nhead=4):
    L, N, E = tgt.shape
    Lm = memory.shape[0]
    H = nhead
    Dh = E // H

    if query_pos is None:
        query_pos = jnp.zeros_like(tgt)
    if pos is None:
        pos = jnp.zeros_like(memory)

    # batch-major flatten: (L, N, E) -> (N*L, E) so each batch's rows are contiguous.
    def flat(a):
        return a.transpose(1, 0, 2).reshape(-1, a.shape[-1])

    bf16 = jnp.bfloat16

    def wT(w):   # PyTorch (Nout, K) layout -> (K, Nout) bf16 for natural MXU RHS feed
        return w.T.astype(bf16)

    def brow(b):  # (Nout,) -> (1, Nout) f32
        return b.reshape(1, -1).astype(jnp.float32)

    sa = params["self_attn"]
    ca = params["cross_attn"]

    args = (
        flat(tgt), flat(memory), flat(query_pos), flat(pos),
        # self-attention: packed q/k projection, then v, then out-proj
        wT(jnp.concatenate([sa["w_q"], sa["w_k"]], axis=0)),
        brow(jnp.concatenate([sa["b_q"], sa["b_k"]], axis=0)),
        wT(sa["w_v"]), brow(sa["b_v"]),
        wT(sa["w_o"]), brow(sa["b_o"]),
        # cross-attention (q/k/v take different inputs -> separate matmuls)
        wT(ca["w_q"]), brow(ca["b_q"]),
        wT(ca["w_k"]), brow(ca["b_k"]),
        wT(ca["w_v"]), brow(ca["b_v"]),
        wT(ca["w_o"]), brow(ca["b_o"]),
        # feed-forward
        wT(params["lin1_w"]), brow(params["lin1_b"]),
        wT(params["lin2_w"]), brow(params["lin2_b"]),
        # layer norms
        brow(params["norm1_w"]), brow(params["norm1_b"]),
        brow(params["norm2_w"]), brow(params["norm2_b"]),
        brow(params["norm3_w"]), brow(params["norm3_b"]),
    )

    out2d = pl.pallas_call(
        partial(_decoder_layer_kernel, N=N, Lq=L, Lk=Lm, H=H, Dh=Dh),
        out_shape=jax.ShapeDtypeStruct((N * L, E), tgt.dtype),
        scratch_shapes=[pltpu.VMEM((N * L, E), jnp.float32)],
    )(*args)

    return out2d.reshape(N, L, E).transpose(1, 0, 2)


# ---------------------------------------------------------------------------
# Pure-JAX f32 reference (PyTorch TransformerDecoderLayer semantics, eval mode)
# ---------------------------------------------------------------------------

def _mha_ref(query, key, value, p, nhead):
    Lq, N, E = query.shape
    Lk = key.shape[0]
    H = nhead
    Dh = E // H
    hp = lax.Precision.HIGHEST

    def proj(x, w, b):
        return jnp.einsum("lne,oe->lno", x, w, precision=hp) + b

    q = proj(query, p["w_q"], p["b_q"]) * (Dh ** -0.5)
    k = proj(key, p["w_k"], p["b_k"])
    v = proj(value, p["w_v"], p["b_v"])
    q = q.reshape(Lq, N, H, Dh)
    k = k.reshape(Lk, N, H, Dh)
    v = v.reshape(Lk, N, H, Dh)
    s = jnp.einsum("qnhd,knhd->nhqk", q, k, precision=hp)
    a = jax.nn.softmax(s, axis=-1)
    o = jnp.einsum("nhqk,knhd->qnhd", a, v, precision=hp).reshape(Lq, N, E)
    return jnp.einsum("lne,oe->lno", o, p["w_o"], precision=hp) + p["b_o"]


def _decoder_layer_ref(tgt, memory, params, pos, query_pos, nhead):
    hp = lax.Precision.HIGHEST

    def ln(x, g, b):
        mu = x.mean(-1, keepdims=True)
        var = ((x - mu) ** 2).mean(-1, keepdims=True)
        return (x - mu) / jnp.sqrt(var + 1e-5) * g + b

    q = tgt + query_pos
    t = ln(tgt + _mha_ref(q, q, tgt, params["self_attn"], nhead),
           params["norm1_w"], params["norm1_b"])
    t = ln(t + _mha_ref(t + query_pos, memory + pos, memory,
                        params["cross_attn"], nhead),
           params["norm2_w"], params["norm2_b"])
    h = jnp.maximum(jnp.einsum("lne,fe->lnf", t, params["lin1_w"], precision=hp)
                    + params["lin1_b"], 0.0)
    t2 = jnp.einsum("lnf,ef->lne", h, params["lin2_w"], precision=hp) + params["lin2_b"]
    return ln(t + t2, params["norm3_w"], params["norm3_b"])


# ---------------------------------------------------------------------------
# Deterministic parameter construction
# ---------------------------------------------------------------------------

def make_mha_params(key, E):
    ks = jax.random.split(key, 4)
    in_proj_w = 0.02 * jax.random.normal(ks[0], (3 * E, E), jnp.float32)
    in_proj_b = 0.02 * jax.random.normal(ks[1], (3 * E,), jnp.float32)
    out_w = 0.02 * jax.random.normal(ks[2], (E, E), jnp.float32)
    out_b = 0.02 * jax.random.normal(ks[3], (E,), jnp.float32)
    return {
        "w_q": in_proj_w[:E], "b_q": in_proj_b[:E],
        "w_k": in_proj_w[E:2 * E], "b_k": in_proj_b[E:2 * E],
        "w_v": in_proj_w[2 * E:], "b_v": in_proj_b[2 * E:],
        "w_o": out_w, "b_o": out_b,
    }


def make_params(key, E, dff):
    ks = jax.random.split(key, 6)
    return {
        "self_attn": make_mha_params(ks[0], E),
        "cross_attn": make_mha_params(ks[1], E),
        "lin1_w": 0.02 * jax.random.normal(ks[2], (dff, E), jnp.float32),
        "lin1_b": 0.02 * jax.random.normal(ks[3], (dff,), jnp.float32),
        "lin2_w": 0.02 * jax.random.normal(ks[4], (E, dff), jnp.float32),
        "lin2_b": 0.02 * jax.random.normal(ks[5], (E,), jnp.float32),
        # LayerNorm affine params: PyTorch defaults (ones / zeros)
        "norm1_w": jnp.ones((E,), jnp.float32), "norm1_b": jnp.zeros((E,), jnp.float32),
        "norm2_w": jnp.ones((E,), jnp.float32), "norm2_b": jnp.zeros((E,), jnp.float32),
        "norm3_w": jnp.ones((E,), jnp.float32), "norm3_b": jnp.zeros((E,), jnp.float32),
    }


# ---------------------------------------------------------------------------
# Main
# ---------------------------------------------------------------------------

if __name__ == "__main__":
    d_model = 32
    nhead = 4
    dim_feedforward = 64
    L_tgt = 8     # target sequence length
    L_mem = 16    # memory sequence length
    N = 2         # batch

    root = jax.random.PRNGKey(0)
    k_p, k_tgt, k_mem, k_qpos, k_pos = jax.random.split(root, 5)

    params = make_params(k_p, d_model, dim_feedforward)

    tgt = jax.random.normal(k_tgt, (L_tgt, N, d_model), jnp.float32)
    memory = jax.random.normal(k_mem, (L_mem, N, d_model), jnp.float32)
    query_pos = jax.random.normal(k_qpos, (L_tgt, N, d_model), jnp.float32)
    pos = jax.random.normal(k_pos, (L_mem, N, d_model), jnp.float32)

    fwd = jax.jit(partial(transformer_decoder_layer, nhead=nhead))
    out = fwd(tgt, memory, params, pos=pos, query_pos=query_pos)
    jax.block_until_ready(out)

    ref = _decoder_layer_ref(tgt, memory, params, pos, query_pos, nhead)

    assert out.shape == (L_tgt, N, d_model)
    assert bool(jnp.all(jnp.isfinite(out)))
    # bf16 MXU operands + approx reciprocal => small deviation vs f32 reference.
    max_err = float(jnp.max(jnp.abs(out - ref)))
    assert max_err < 5e-2, f"max abs error vs reference: {max_err}"
    print("KERNEL_OK")
</pallas_src>

<mosaic_0001>
module attributes {stable_mosaic.version = 11 : i64} {
  func.func @_decoder_layer_kernel(%arg0: memref<16x32xf32, #tpu.memory_space<vmem>>, %arg1: memref<32x32xf32, #tpu.memory_space<vmem>>, %arg2: memref<16x32xf32, #tpu.memory_space<vmem>>, %arg3: memref<32x32xf32, #tpu.memory_space<vmem>>, %arg4: memref<32x64xbf16, #tpu.memory_space<vmem>>, %arg5: memref<1x64xf32, #tpu.memory_space<vmem>>, %arg6: memref<32x32xbf16, #tpu.memory_space<vmem>>, %arg7: memref<1x32xf32, #tpu.memory_space<vmem>>, %arg8: memref<32x32xbf16, #tpu.memory_space<vmem>>, %arg9: memref<1x32xf32, #tpu.memory_space<vmem>>, %arg10: memref<32x32xbf16, #tpu.memory_space<vmem>>, %arg11: memref<1x32xf32, #tpu.memory_space<vmem>>, %arg12: memref<32x32xbf16, #tpu.memory_space<vmem>>, %arg13: memref<1x32xf32, #tpu.memory_space<vmem>>, %arg14: memref<32x32xbf16, #tpu.memory_space<vmem>>, %arg15: memref<1x32xf32, #tpu.memory_space<vmem>>, %arg16: memref<32x32xbf16, #tpu.memory_space<vmem>>, %arg17: memref<1x32xf32, #tpu.memory_space<vmem>>, %arg18: memref<32x64xbf16, #tpu.memory_space<vmem>>, %arg19: memref<1x64xf32, #tpu.memory_space<vmem>>, %arg20: memref<64x32xbf16, #tpu.memory_space<vmem>>, %arg21: memref<1x32xf32, #tpu.memory_space<vmem>>, %arg22: memref<1x32xf32, #tpu.memory_space<vmem>>, %arg23: memref<1x32xf32, #tpu.memory_space<vmem>>, %arg24: memref<1x32xf32, #tpu.memory_space<vmem>>, %arg25: memref<1x32xf32, #tpu.memory_space<vmem>>, %arg26: memref<1x32xf32, #tpu.memory_space<vmem>>, %arg27: memref<1x32xf32, #tpu.memory_space<vmem>>, %arg28: memref<16x32xf32, #tpu.memory_space<vmem>>, %arg29: memref<16x32xf32, #tpu.memory_space<vmem>>) attributes {dimension_semantics = [], scalar_prefetch = 0 : i64, scratch_operands = 1 : i64, tpu.core_type = #tpu.core_type<tc>} {
    %c0 = arith.constant 0 : index
    %c0_0 = arith.constant 0 : index
    %0 = vector.load %arg0[%c0, %c0_0] : memref<16x32xf32, #tpu.memory_space<vmem>>, vector<16x32xf32>
    %c0_1 = arith.constant 0 : index
    %c0_2 = arith.constant 0 : index
    %1 = vector.load %arg1[%c0_1, %c0_2] : memref<32x32xf32, #tpu.memory_space<vmem>>, vector<32x32xf32>
    %c0_3 = arith.constant 0 : index
    %c0_4 = arith.constant 0 : index
    %2 = vector.load %arg2[%c0_3, %c0_4] : memref<16x32xf32, #tpu.memory_space<vmem>>, vector<16x32xf32>
    %c0_5 = arith.constant 0 : index
    %c0_6 = arith.constant 0 : index
    %3 = vector.load %arg3[%c0_5, %c0_6] : memref<32x32xf32, #tpu.memory_space<vmem>>, vector<32x32xf32>
    %4 = arith.addf %0, %2 : vector<16x32xf32>
    %5 = arith.truncf %4 : vector<16x32xf32> to vector<16x32xbf16>
    %c0_7 = arith.constant 0 : index
    %c0_8 = arith.constant 0 : index
    %6 = vector.load %arg4[%c0_7, %c0_8] : memref<32x64xbf16, #tpu.memory_space<vmem>>, vector<32x64xbf16>
    %cst = arith.constant dense<0.000000e+00> : vector<16x64xf32>
    %7 = tpu.matmul %5, %6, %cst {dimension_numbers = #tpu.dot_dimension_numbers<[1], [0], [0], [1], [0, 0, 1, 1], [], []>} : vector<16x32xbf16>, vector<32x64xbf16>, vector<16x64xf32> -> vector<16x64xf32>
    %c0_9 = arith.constant 0 : index
    %c0_10 = arith.constant 0 : index
    %8 = vector.load %arg5[%c0_9, %c0_10] : memref<1x64xf32, #tpu.memory_space<vmem>>, vector<1x64xf32>
    %9 = vector.broadcast %8 : vector<1x64xf32> to vector<16x64xf32>
    %10 = arith.addf %7, %9 : vector<16x64xf32>
    %11 = vector.extract_strided_slice %10 {offsets = [0, 0], sizes = [16, 32], strides = [1, 1]} : vector<16x64xf32> to vector<16x32xf32>
    %cst_11 = arith.constant 0.353553385 : f32
    %12 = vector.broadcast %cst_11 : f32 to vector<16x32xf32>
    %13 = arith.mulf %11, %12 : vector<16x32xf32>
    %14 = vector.extract_strided_slice %10 {offsets = [0, 32], sizes = [16, 32], strides = [1, 1]} : vector<16x64xf32> to vector<16x32xf32>
    %15 = arith.truncf %0 : vector<16x32xf32> to vector<16x32xbf16>
    %c0_12 = arith.constant 0 : index
    %c0_13 = arith.constant 0 : index
    %16 = vector.load %arg6[%c0_12, %c0_13] : memref<32x32xbf16, #tpu.memory_space<vmem>>, vector<32x32xbf16>
    %cst_14 = arith.constant dense<0.000000e+00> : vector<16x32xf32>
    %17 = tpu.matmul %15, %16, %cst_14 {dimension_numbers = #tpu.dot_dimension_numbers<[1], [0], [0], [1], [0, 0, 1, 1], [], []>} : vector<16x32xbf16>, vector<32x32xbf16>, vector<16x32xf32> -> vector<16x32xf32>
    %c0_15 = arith.constant 0 : index
    %c0_16 = arith.constant 0 : index
    %18 = vector.load %arg7[%c0_15, %c0_16] : memref<1x32xf32, #tpu.memory_space<vmem>>, vector<1x32xf32>
    %19 = vector.broadcast %18 : vector<1x32xf32> to vector<16x32xf32>
    %20 = arith.addf %17, %19 : vector<16x32xf32>
    %21 = vector.extract_strided_slice %13 {offsets = [0, 0], sizes = [8, 32], strides = [1, 1]} : vector<16x32xf32> to vector<8x32xf32>
    %22 = vector.extract_strided_slice %14 {offsets = [0, 0], sizes = [8, 32], strides = [1, 1]} : vector<16x32xf32> to vector<8x32xf32>
    %23 = vector.extract_strided_slice %20 {offsets = [0, 0], sizes = [8, 32], strides = [1, 1]} : vector<16x32xf32> to vector<8x32xf32>
    %24 = vector.extract_strided_slice %21 {offsets = [0, 0], sizes = [8, 8], strides = [1, 1]} : vector<8x32xf32> to vector<8x8xf32>
    %25 = arith.truncf %24 : vector<8x8xf32> to vector<8x8xbf16>
    %26 = vector.extract_strided_slice %22 {offsets = [0, 0], sizes = [8, 8], strides = [1, 1]} : vector<8x32xf32> to vector<8x8xf32>
    %27 = arith.truncf %26 : vector<8x8xf32> to vector<8x8xbf16>
    %cst_17 = arith.constant dense<0.000000e+00> : vector<8x8xf32>
    %28 = tpu.matmul %25, %27, %cst_17 {dimension_numbers = #tpu.dot_dimension_numbers<[1], [1], [0], [0], [0, 0, 1, 0], [], []>} : vector<8x8xbf16>, vector<8x8xbf16>, vector<8x8xf32> -> vector<8x8xf32>
    %cst_18 = arith.constant dense<0xFF800000> : vector<8xf32>
    %29 = vector.multi_reduction <maximumf>, %28, %cst_18 [1] : vector<8x8xf32> to vector<8xf32>
    %30 = vector.shape_cast %29 : vector<8xf32> to vector<8x1xf32>
    %31 = vector.broadcast %30 : vector<8x1xf32> to vector<8x8xf32>
    %32 = arith.subf %28, %31 : vector<8x8xf32>
    %33 = math.exp %32 : vector<8x8xf32>
    %cst_19 = arith.constant dense<0.000000e+00> : vector<8xf32>
    %34 = vector.multi_reduction <add>, %33, %cst_19 [1] : vector<8x8xf32> to vector<8xf32>
    %35 = vector.shape_cast %34 : vector<8xf32> to vector<8x1xf32>
    %36 = tpu.reciprocal %35 {approx = true} : vector<8x1xf32> -> vector<8x1xf32>
    %37 = vector.broadcast %36 : vector<8x1xf32> to vector<8x8xf32>
    %38 = arith.mulf %33, %37 : vector<8x8xf32>
    %39 = arith.truncf %38 : vector<8x8xf32> to vector<8x8xbf16>
    %40 = vector.extract_strided_slice %23 {offsets = [0, 0], sizes = [8, 8], strides = [1, 1]} : vector<8x32xf32> to vector<8x8xf32>
    %41 = arith.truncf %40 : vector<8x8xf32> to vector<8x8xbf16>
    %cst_20 = arith.constant dense<0.000000e+00> : vector<8x8xf32>
    %42 = tpu.matmul %39, %41, %cst_20 {dimension_numbers = #tpu.dot_dimension_numbers<[1], [0], [0], [1], [0, 0, 1, 1], [], []>} : vector<8x8xbf16>, vector<8x8xbf16>, vector<8x8xf32> -> vector<8x8xf32>
    %c0_21 = arith.constant 0 : index
    %c0_22 = arith.constant 0 : index
    %43 = vector.load %arg29[%c0_21, %c0_22] : memref<16x32xf32, #tpu.memory_space<vmem>>, vector<8x8xf32>
    tpu.vector_store %arg29[%c0_21, %c0_22], %42 {strides = array<i32>} : memref<16x32xf32, #tpu.memory_space<vmem>>, vector<8x8xf32>,
    %44 = vector.extract_strided_slice %21 {offsets = [0, 8], sizes = [8, 8], strides = [1, 1]} : vector<8x32xf32> to vector<8x8xf32>
    %45 = arith.truncf %44 : vector<8x8xf32> to vector<8x8xbf16>
    %46 = vector.extract_strided_slice %22 {offsets = [0, 8], sizes = [8, 8], strides = [1, 1]} : vector<8x32xf32> to vector<8x8xf32>
    %47 = arith.truncf %46 : vector<8x8xf32> to vector<8x8xbf16>
    %cst_23 = arith.constant dense<0.000000e+00> : vector<8x8xf32>
    %48 = tpu.matmul %45, %47, %cst_23 {dimension_numbers = #tpu.dot_dimension_numbers<[1], [1], [0], [0], [0, 0, 1, 0], [], []>} : vector<8x8xbf16>, vector<8x8xbf16>, vector<8x8xf32> -> vector<8x8xf32>
    %cst_24 = arith.constant dense<0xFF800000> : vector<8xf32>
    %49 = vector.multi_reduction <maximumf>, %48, %cst_24 [1] : vector<8x8xf32> to vector<8xf32>
    %50 = vector.shape_cast %49 : vector<8xf32> to vector<8x1xf32>
    %51 = vector.broadcast %50 : vector<8x1xf32> to vector<8x8xf32>
    %52 = arith.subf %48, %51 : vector<8x8xf32>
    %53 = math.exp %52 : vector<8x8xf32>
    %cst_25 = arith.constant dense<0.000000e+00> : vector<8xf32>
    %54 = vector.multi_reduction <add>, %53, %cst_25 [1] : vector<8x8xf32> to vector<8xf32>
    %55 = vector.shape_cast %54 : vector<8xf32> to vector<8x1xf32>
    %56 = tpu.reciprocal %55 {approx = true} : vector<8x1xf32> -> vector<8x1xf32>
    %57 = vector.broadcast %56 : vector<8x1xf32> to vector<8x8xf32>
    %58 = arith.mulf %53, %57 : vector<8x8xf32>
    %59 = arith.truncf %58 : vector<8x8xf32> to vector<8x8xbf16>
    %60 = vector.extract_strided_slice %23 {offsets = [0, 8], sizes = [8, 8], strides = [1, 1]} : vector<8x32xf32> to vector<8x8xf32>
    %61 = arith.truncf %60 : vector<8x8xf32> to vector<8x8xbf16>
    %cst_26 = arith.constant dense<0.000000e+00> : vector<8x8xf32>
    %62 = tpu.matmul %59, %61, %cst_26 {dimension_numbers = #tpu.dot_dimension_numbers<[1], [0], [0], [1], [0, 0, 1, 1], [], []>} : vector<8x8xbf16>, vector<8x8xbf16>, vector<8x8xf32> -> vector<8x8xf32>
    %c0_27 = arith.constant 0 : index
    %c8 = arith.constant 8 : index
    %63 = vector.load %arg29[%c0_27, %c8] : memref<16x32xf32, #tpu.memory_space<vmem>>, vector<8x8xf32>
    tpu.vector_store %arg29[%c0_27, %c8], %62 {strides = array<i32>} : memref<16x32xf32, #tpu.memory_space<vmem>>, vector<8x8xf32>,
    %64 = vector.extract_strided_slice %21 {offsets = [0, 16], sizes = [8, 8], strides = [1, 1]} : vector<8x32xf32> to vector<8x8xf32>
    %65 = arith.truncf %64 : vector<8x8xf32> to vector<8x8xbf16>
    %66 = vector.extract_strided_slice %22 {offsets = [0, 16], sizes = [8, 8], strides = [1, 1]} : vector<8x32xf32> to vector<8x8xf32>
    %67 = arith.truncf %66 : vector<8x8xf32> to vector<8x8xbf16>
    %cst_28 = arith.constant dense<0.000000e+00> : vector<8x8xf32>
    %68 = tpu.matmul %65, %67, %cst_28 {dimension_numbers = #tpu.dot_dimension_numbers<[1], [1], [0], [0], [0, 0, 1, 0], [], []>} : vector<8x8xbf16>, vector<8x8xbf16>, vector<8x8xf32> -> vector<8x8xf32>
    %cst_29 = arith.constant dense<0xFF800000> : vector<8xf32>
    %69 = vector.multi_reduction <maximumf>, %68, %cst_29 [1] : vector<8x8xf32> to vector<8xf32>
    %70 = vector.shape_cast %69 : vector<8xf32> to vector<8x1xf32>
    %71 = vector.broadcast %70 : vector<8x1xf32> to vector<8x8xf32>
    %72 = arith.subf %68, %71 : vector<8x8xf32>
    %73 = math.exp %72 : vector<8x8xf32>
    %cst_30 = arith.constant dense<0.000000e+00> : vector<8xf32>
    %74 = vector.multi_reduction <add>, %73, %cst_30 [1] : vector<8x8xf32> to vector<8xf32>
    %75 = vector.shape_cast %74 : vector<8xf32> to vector<8x1xf32>
    %76 = tpu.reciprocal %75 {approx = true} : vector<8x1xf32> -> vector<8x1xf32>
    %77 = vector.broadcast %76 : vector<8x1xf32> to vector<8x8xf32>
    %78 = arith.mulf %73, %77 : vector<8x8xf32>
    %79 = arith.truncf %78 : vector<8x8xf32> to vector<8x8xbf16>
    %80 = vector.extract_strided_slice %23 {offsets = [0, 16], sizes = [8, 8], strides = [1, 1]} : vector<8x32xf32> to vector<8x8xf32>
    %81 = arith.truncf %80 : vector<8x8xf32> to vector<8x8xbf16>
    %cst_31 = arith.constant dense<0.000000e+00> : vector<8x8xf32>
    %82 = tpu.matmul %79, %81, %cst_31 {dimension_numbers = #tpu.dot_dimension_numbers<[1], [0], [0], [1], [0, 0, 1, 1], [], []>} : vector<8x8xbf16>, vector<8x8xbf16>, vector<8x8xf32> -> vector<8x8xf32>
    %c0_32 = arith.constant 0 : index
    %c16 = arith.constant 16 : index
    %83 = vector.load %arg29[%c0_32, %c16] : memref<16x32xf32, #tpu.memory_space<vmem>>, vector<8x8xf32>
    tpu.vector_store %arg29[%c0_32, %c16], %82 {strides = array<i32>} : memref<16x32xf32, #tpu.memory_space<vmem>>, vector<8x8xf32>,
    %84 = vector.extract_strided_slice %21 {offsets = [0, 24], sizes = [8, 8], strides = [1, 1]} : vector<8x32xf32> to vector<8x8xf32>
    %85 = arith.truncf %84 : vector<8x8xf32> to vector<8x8xbf16>
    %86 = vector.extract_strided_slice %22 {offsets = [0, 24], sizes = [8, 8], strides = [1, 1]} : vector<8x32xf32> to vector<8x8xf32>
    %87 = arith.truncf %86 : vector<8x8xf32> to vector<8x8xbf16>
    %cst_33 = arith.constant dense<0.000000e+00> : vector<8x8xf32>
    %88 = tpu.matmul %85, %87, %cst_33 {dimension_numbers = #tpu.dot_dimension_numbers<[1], [1], [0], [0], [0, 0, 1, 0], [], []>} : vector<8x8xbf16>, vector<8x8xbf16>, vector<8x8xf32> -> vector<8x8xf32>
    %cst_34 = arith.constant dense<0xFF800000> : vector<8xf32>
    %89 = vector.multi_reduction <maximumf>, %88, %cst_34 [1] : vector<8x8xf32> to vector<8xf32>
    %90 = vector.shape_cast %89 : vector<8xf32> to vector<8x1xf32>
    %91 = vector.broadcast %90 : vector<8x1xf32> to vector<8x8xf32>
    %92 = arith.subf %88, %91 : vector<8x8xf32>
    %93 = math.exp %92 : vector<8x8xf32>
    %cst_35 = arith.constant dense<0.000000e+00> : vector<8xf32>
    %94 = vector.multi_reduction <add>, %93, %cst_35 [1] : vector<8x8xf32> to vector<8xf32>
    %95 = vector.shape_cast %94 : vector<8xf32> to vector<8x1xf32>
    %96 = tpu.reciprocal %95 {approx = true} : vector<8x1xf32> -> vector<8x1xf32>
    %97 = vector.broadcast %96 : vector<8x1xf32> to vector<8x8xf32>
    %98 = arith.mulf %93, %97 : vector<8x8xf32>
    %99 = arith.truncf %98 : vector<8x8xf32> to vector<8x8xbf16>
    %100 = vector.extract_strided_slice %23 {offsets = [0, 24], sizes = [8, 8], strides = [1, 1]} : vector<8x32xf32> to vector<8x8xf32>
    %101 = arith.truncf %100 : vector<8x8xf32> to vector<8x8xbf16>
    %cst_36 = arith.constant dense<0.000000e+00> : vector<8x8xf32>
    %102 = tpu.matmul %99, %101, %cst_36 {dimension_numbers = #tpu.dot_dimension_numbers<[1], [0], [0], [1], [0, 0, 1, 1], [], []>} : vector<8x8xbf16>, vector<8x8xbf16>, vector<8x8xf32> -> vector<8x8xf32>
    %c0_37 = arith.constant 0 : index
    %c24 = arith.constant 24 : index
    %103 = vector.load %arg29[%c0_37, %c24] : memref<16x32xf32, #tpu.memory_space<vmem>>, vector<8x8xf32>
    tpu.vector_store %arg29[%c0_37, %c24], %102 {strides = array<i32>} : memref<16x32xf32, #tpu.memory_space<vmem>>, vector<8x8xf32>,
    %104 = vector.extract_strided_slice %13 {offsets = [8, 0], sizes = [8, 32], strides = [1, 1]} : vector<16x32xf32> to vector<8x32xf32>
    %105 = vector.extract_strided_slice %14 {offsets = [8, 0], sizes = [8, 32], strides = [1, 1]} : vector<16x32xf32> to vector<8x32xf32>
    %106 = vector.extract_strided_slice %20 {offsets = [8, 0], sizes = [8, 32], strides = [1, 1]} : vector<16x32xf32> to vector<8x32xf32>
    %107 = vector.extract_strided_slice %104 {offsets = [0, 0], sizes = [8, 8], strides = [1, 1]} : vector<8x32xf32> to vector<8x8xf32>
    %108 = arith.truncf %107 : vector<8x8xf32> to vector<8x8xbf16>
    %109 = vector.extract_strided_slice %105 {offsets = [0, 0], sizes = [8, 8], strides = [1, 1]} : vector<8x32xf32> to vector<8x8xf32>
    %110 = arith.truncf %109 : vector<8x8xf32> to vector<8x8xbf16>
    %cst_38 = arith.constant dense<0.000000e+00> : vector<8x8xf32>
    %111 = tpu.matmul %108, %110, %cst_38 {dimension_numbers = #tpu.dot_dimension_numbers<[1], [1], [0], [0], [0, 0, 1, 0], [], []>} : vector<8x8xbf16>, vector<8x8xbf16>, vector<8x8xf32> -> vector<8x8xf32>
    %cst_39 = arith.constant dense<0xFF800000> : vector<8xf32>
    %112 = vector.multi_reduction <maximumf>, %111, %cst_39 [1] : vector<8x8xf32> to vector<8xf32>
    %113 = vector.shape_cast %112 : vector<8xf32> to vector<8x1xf32>
    %114 = vector.broadcast %113 : vector<8x1xf32> to vector<8x8xf32>
    %115 = arith.subf %111, %114 : vector<8x8xf32>
    %116 = math.exp %115 : vector<8x8xf32>
    %cst_40 = arith.constant dense<0.000000e+00> : vector<8xf32>
    %117 = vector.multi_reduction <add>, %116, %cst_40 [1] : vector<8x8xf32> to vector<8xf32>
    %118 = vector.shape_cast %117 : vector<8xf32> to vector<8x1xf32>
    %119 = tpu.reciprocal %118 {approx = true} : vector<8x1xf32> -> vector<8x1xf32>
    %120 = vector.broadcast %119 : vector<8x1xf32> to vector<8x8xf32>
    %121 = arith.mulf %116, %120 : vector<8x8xf32>
    %122 = arith.truncf %121 : vector<8x8xf32> to vector<8x8xbf16>
    %123 = vector.extract_strided_slice %106 {offsets = [0, 0], sizes = [8, 8], strides = [1, 1]} : vector<8x32xf32> to vector<8x8xf32>
    %124 = arith.truncf %123 : vector<8x8xf32> to vector<8x8xbf16>
    %cst_41 = arith.constant dense<0.000000e+00> : vector<8x8xf32>
    %125 = tpu.matmul %122, %124, %cst_41 {dimension_numbers = #tpu.dot_dimension_numbers<[1], [0], [0], [1], [0, 0, 1, 1], [], []>} : vector<8x8xbf16>, vector<8x8xbf16>, vector<8x8xf32> -> vector<8x8xf32>
    %c8_42 = arith.constant 8 : index
    %c0_43 = arith.constant 0 : index
    %126 = vector.load %arg29[%c8_42, %c0_43] : memref<16x32xf32, #tpu.memory_space<vmem>>, vector<8x8xf32>
    tpu.vector_store %arg29[%c8_42, %c0_43], %125 {strides = array<i32>} : memref<16x32xf32, #tpu.memory_space<vmem>>, vector<8x8xf32>,
    %127 = vector.extract_strided_slice %104 {offsets = [0, 8], sizes = [8, 8], strides = [1, 1]} : vector<8x32xf32> to vector<8x8xf32>
    %128 = arith.truncf %127 : vector<8x8xf32> to vector<8x8xbf16>
    %129 = vector.extract_strided_slice %105 {offsets = [0, 8], sizes = [8, 8], strides = [1, 1]} : vector<8x32xf32> to vector<8x8xf32>
    %130 = arith.truncf %129 : vector<8x8xf32> to vector<8x8xbf16>
    %cst_44 = arith.constant dense<0.000000e+00> : vector<8x8xf32>
    %131 = tpu.matmul %128, %130, %cst_44 {dimension_numbers = #tpu.dot_dimension_numbers<[1], [1], [0], [0], [0, 0, 1, 0], [], []>} : vector<8x8xbf16>, vector<8x8xbf16>, vector<8x8xf32> -> vector<8x8xf32>
    %cst_45 = arith.constant dense<0xFF800000> : vector<8xf32>
    %132 = vector.multi_reduction <maximumf>, %131, %cst_45 [1] : vector<8x8xf32> to vector<8xf32>
    %133 = vector.shape_cast %132 : vector<8xf32> to vector<8x1xf32>
    %134 = vector.broadcast %133 : vector<8x1xf32> to vector<8x8xf32>
    %135 = arith.subf %131, %134 : vector<8x8xf32>
    %136 = math.exp %135 : vector<8x8xf32>
    %cst_46 = arith.constant dense<0.000000e+00> : vector<8xf32>
    %137 = vector.multi_reduction <add>, %136, %cst_46 [1] : vector<8x8xf32> to vector<8xf32>
    %138 = vector.shape_cast %137 : vector<8xf32> to vector<8x1xf32>
    %139 = tpu.reciprocal %138 {approx = true} : vector<8x1xf32> -> vector<8x1xf32>
    %140 = vector.broadcast %139 : vector<8x1xf32> to vector<8x8xf32>
    %141 = arith.mulf %136, %140 : vector<8x8xf32>
    %142 = arith.truncf %141 : vector<8x8xf32> to vector<8x8xbf16>
    %143 = vector.extract_strided_slice %106 {offsets = [0, 8], sizes = [8, 8], strides = [1, 1]} : vector<8x32xf32> to vector<8x8xf32>
    %144 = arith.truncf %143 : vector<8x8xf32> to vector<8x8xbf16>
    %cst_47 = arith.constant dense<0.000000e+00> : vector<8x8xf32>
    %145 = tpu.matmul %142, %144, %cst_47 {dimension_numbers = #tpu.dot_dimension_numbers<[1], [0], [0], [1], [0, 0, 1, 1], [], []>} : vector<8x8xbf16>, vector<8x8xbf16>, vector<8x8xf32> -> vector<8x8xf32>
    %c8_48 = arith.constant 8 : index
    %c8_49 = arith.constant 8 : index
    %146 = vector.load %arg29[%c8_48, %c8_49] : memref<16x32xf32, #tpu.memory_space<vmem>>, vector<8x8xf32>
    tpu.vector_store %arg29[%c8_48, %c8_49], %145 {strides = array<i32>} : memref<16x32xf32, #tpu.memory_space<vmem>>, vector<8x8xf32>,
    %147 = vector.extract_strided_slice %104 {offsets = [0, 16], sizes = [8, 8], strides = [1, 1]} : vector<8x32xf32> to vector<8x8xf32>
    %148 = arith.truncf %147 : vector<8x8xf32> to vector<8x8xbf16>
    %149 = vector.extract_strided_slice %105 {offsets = [0, 16], sizes = [8, 8], strides = [1, 1]} : vector<8x32xf32> to vector<8x8xf32>
    %150 = arith.truncf %149 : vector<8x8xf32> to vector<8x8xbf16>
    %cst_50 = arith.constant dense<0.000000e+00> : vector<8x8xf32>
    %151 = tpu.matmul %148, %150, %cst_50 {dimension_numbers = #tpu.dot_dimension_numbers<[1], [1], [0], [0], [0, 0, 1, 0], [], []>} : vector<8x8xbf16>, vector<8x8xbf16>, vector<8x8xf32> -> vector<8x8xf32>
    %cst_51 = arith.constant dense<0xFF800000> : vector<8xf32>
    %152 = vector.multi_reduction <maximumf>, %151, %cst_51 [1] : vector<8x8xf32> to vector<8xf32>
    %153 = vector.shape_cast %152 : vector<8xf32> to vector<8x1xf32>
    %154 = vector.broadcast %153 : vector<8x1xf32> to vector<8x8xf32>
    %155 = arith.subf %151, %154 : vector<8x8xf32>
    %156 = math.exp %155 : vector<8x8xf32>
    %cst_52 = arith.constant dense<0.000000e+00> : vector<8xf32>
    %157 = vector.multi_reduction <add>, %156, %cst_52 [1] : vector<8x8xf32> to vector<8xf32>
    %158 = vector.shape_cast %157 : vector<8xf32> to vector<8x1xf32>
    %159 = tpu.reciprocal %158 {approx = true} : vector<8x1xf32> -> vector<8x1xf32>
    %160 = vector.broadcast %159 : vector<8x1xf32> to vector<8x8xf32>
    %161 = arith.mulf %156, %160 : vector<8x8xf32>
    %162 = arith.truncf %161 : vector<8x8xf32> to vector<8x8xbf16>
    %163 = vector.extract_strided_slice %106 {offsets = [0, 16], sizes = [8, 8], strides = [1, 1]} : vector<8x32xf32> to vector<8x8xf32>
    %164 = arith.truncf %163 : vector<8x8xf32> to vector<8x8xbf16>
    %cst_53 = arith.constant dense<0.000000e+00> : vector<8x8xf32>
    %165 = tpu.matmul %162, %164, %cst_53 {dimension_numbers = #tpu.dot_dimension_numbers<[1], [0], [0], [1], [0, 0, 1, 1], [], []>} : vector<8x8xbf16>, vector<8x8xbf16>, vector<8x8xf32> -> vector<8x8xf32>
    %c8_54 = arith.constant 8 : index
    %c16_55 = arith.constant 16 : index
    %166 = vector.load %arg29[%c8_54, %c16_55] : memref<16x32xf32, #tpu.memory_space<vmem>>, vector<8x8xf32>
    tpu.vector_store %arg29[%c8_54, %c16_55], %165 {strides = array<i32>} : memref<16x32xf32, #tpu.memory_space<vmem>>, vector<8x8xf32>,
    %167 = vector.extract_strided_slice %104 {offsets = [0, 24], sizes = [8, 8], strides = [1, 1]} : vector<8x32xf32> to vector<8x8xf32>
    %168 = arith.truncf %167 : vector<8x8xf32> to vector<8x8xbf16>
    %169 = vector.extract_strided_slice %105 {offsets = [0, 24], sizes = [8, 8], strides = [1, 1]} : vector<8x32xf32> to vector<8x8xf32>
    %170 = arith.truncf %169 : vector<8x8xf32> to vector<8x8xbf16>
    %cst_56 = arith.constant dense<0.000000e+00> : vector<8x8xf32>
    %171 = tpu.matmul %168, %170, %cst_56 {dimension_numbers = #tpu.dot_dimension_numbers<[1], [1], [0], [0], [0, 0, 1, 0], [], []>} : vector<8x8xbf16>, vector<8x8xbf16>, vector<8x8xf32> -> vector<8x8xf32>
    %cst_57 = arith.constant dense<0xFF800000> : vector<8xf32>
    %172 = vector.multi_reduction <maximumf>, %171, %cst_57 [1] : vector<8x8xf32> to vector<8xf32>
    %173 = vector.shape_cast %172 : vector<8xf32> to vector<8x1xf32>
    %174 = vector.broadcast %173 : vector<8x1xf32> to vector<8x8xf32>
    %175 = arith.subf %171, %174 : vector<8x8xf32>
    %176 = math.exp %175 : vector<8x8xf32>
    %cst_58 = arith.constant dense<0.000000e+00> : vector<8xf32>
    %177 = vector.multi_reduction <add>, %176, %cst_58 [1] : vector<8x8xf32> to vector<8xf32>
    %178 = vector.shape_cast %177 : vector<8xf32> to vector<8x1xf32>
    %179 = tpu.reciprocal %178 {approx = true} : vector<8x1xf32> -> vector<8x1xf32>
    %180 = vector.broadcast %179 : vector<8x1xf32> to vector<8x8xf32>
    %181 = arith.mulf %176, %180 : vector<8x8xf32>
    %182 = arith.truncf %181 : vector<8x8xf32> to vector<8x8xbf16>
    %183 = vector.extract_strided_slice %106 {offsets = [0, 24], sizes = [8, 8], strides = [1, 1]} : vector<8x32xf32> to vector<8x8xf32>
    %184 = arith.truncf %183 : vector<8x8xf32> to vector<8x8xbf16>
    %cst_59 = arith.constant dense<0.000000e+00> : vector<8x8xf32>
    %185 = tpu.matmul %182, %184, %cst_59 {dimension_numbers = #tpu.dot_dimension_numbers<[1], [0], [0], [1], [0, 0, 1, 1], [], []>} : vector<8x8xbf16>, vector<8x8xbf16>, vector<8x8xf32> -> vector<8x8xf32>
    %c8_60 = arith.constant 8 : index
    %c24_61 = arith.constant 24 : index
    %186 = vector.load %arg29[%c8_60, %c24_61] : memref<16x32xf32, #tpu.memory_space<vmem>>, vector<8x8xf32>
    tpu.vector_store %arg29[%c8_60, %c24_61], %185 {strides = array<i32>} : memref<16x32xf32, #tpu.memory_space<vmem>>, vector<8x8xf32>,
    %c0_62 = arith.constant 0 : index
    %c0_63 = arith.constant 0 : index
    %187 = vector.load %arg29[%c0_62, %c0_63] : memref<16x32xf32, #tpu.memory_space<vmem>>, vector<16x32xf32>
    %188 = arith.truncf %187 : vector<16x32xf32> to vector<16x32xbf16>
    %c0_64 = arith.constant 0 : index
    %c0_65 = arith.constant 0 : index
    %189 = vector.load %arg8[%c0_64, %c0_65] : memref<32x32xbf16, #tpu.memory_space<vmem>>, vector<32x32xbf16>
    %cst_66 = arith.constant dense<0.000000e+00> : vector<16x32xf32>
    %190 = tpu.matmul %188, %189, %cst_66 {dimension_numbers = #tpu.dot_dimension_numbers<[1], [0], [0], [1], [0, 0, 1, 1], [], []>} : vector<16x32xbf16>, vector<32x32xbf16>, vector<16x32xf32> -> vector<16x32xf32>
    %191 = arith.addf %0, %190 : vector<16x32xf32>
    %c0_67 = arith.constant 0 : index
    %c0_68 = arith.constant 0 : index
    %192 = vector.load %arg9[%c0_67, %c0_68] : memref<1x32xf32, #tpu.memory_space<vmem>>, vector<1x32xf32>
    %193 = vector.broadcast %192 : vector<1x32xf32> to vector<16x32xf32>
    %194 = arith.addf %191, %193 : vector<16x32xf32>
    %cst_69 = arith.constant dense<0.000000e+00> : vector<16xf32>
    %195 = vector.multi_reduction <add>, %194, %cst_69 [1] : vector<16x32xf32> to vector<16xf32>
    %196 = vector.shape_cast %195 : vector<16xf32> to vector<16x1xf32>
    %cst_70 = arith.constant 3.200000e+01 : f32
    %197 = vector.broadcast %cst_70 : f32 to vector<16x1xf32>
    %198 = arith.divf %196, %197 : vector<16x1xf32>
    %199 = vector.broadcast %198 : vector<16x1xf32> to vector<16x32xf32>
    %200 = arith.subf %194, %199 : vector<16x32xf32>
    %201 = arith.mulf %200, %200 : vector<16x32xf32>
    %cst_71 = arith.constant dense<0.000000e+00> : vector<16xf32>
    %202 = vector.multi_reduction <add>, %201, %cst_71 [1] : vector<16x32xf32> to vector<16xf32>
    %203 = vector.shape_cast %202 : vector<16xf32> to vector<16x1xf32>
    %cst_72 = arith.constant 3.200000e+01 : f32
    %204 = vector.broadcast %cst_72 : f32 to vector<16x1xf32>
    %205 = arith.divf %203, %204 : vector<16x1xf32>
    %206 = vector.broadcast %198 : vector<16x1xf32> to vector<16x32xf32>
    %207 = arith.subf %194, %206 : vector<16x32xf32>
    %cst_73 = arith.constant 9.99999974E-6 : f32
    %208 = vector.broadcast %cst_73 : f32 to vector<16x1xf32>
    %209 = arith.addf %205, %208 : vector<16x1xf32>
    %210 = math.rsqrt %209 : vector<16x1xf32>
    %211 = vector.broadcast %210 : vector<16x1xf32> to vector<16x32xf32>
    %212 = arith.mulf %207, %211 : vector<16x32xf32>
    %c0_74 = arith.constant 0 : index
    %c0_75 = arith.constant 0 : index
    %213 = vector.load %arg22[%c0_74, %c0_75] : memref<1x32xf32, #tpu.memory_space<vmem>>, vector<1x32xf32>
    %214 = vector.broadcast %213 : vector<1x32xf32> to vector<16x32xf32>
    %215 = arith.mulf %212, %214 : vector<16x32xf32>
    %c0_76 = arith.constant 0 : index
    %c0_77 = arith.constant 0 : index
    %216 = vector.load %arg23[%c0_76, %c0_77] : memref<1x32xf32, #tpu.memory_space<vmem>>, vector<1x32xf32>
    %217 = vector.broadcast %216 : vector<1x32xf32> to vector<16x32xf32>
    %218 = arith.addf %215, %217 : vector<16x32xf32>
    %219 = arith.addf %218, %2 : vector<16x32xf32>
    %220 = arith.truncf %219 : vector<16x32xf32> to vector<16x32xbf16>
    %c0_78 = arith.constant 0 : index
    %c0_79 = arith.constant 0 : index
    %221 = vector.load %arg10[%c0_78, %c0_79] : memref<32x32xbf16, #tpu.memory_space<vmem>>, vector<32x32xbf16>
    %cst_80 = arith.constant dense<0.000000e+00> : vector<16x32xf32>
    %222 = tpu.matmul %220, %221, %cst_80 {dimension_numbers = #tpu.dot_dimension_numbers<[1], [0], [0], [1], [0, 0, 1, 1], [], []>} : vector<16x32xbf16>, vector<32x32xbf16>, vector<16x32xf32> -> vector<16x32xf32>
    %c0_81 = arith.constant 0 : index
    %c0_82 = arith.constant 0 : index
    %223 = vector.load %arg11[%c0_81, %c0_82] : memref<1x32xf32, #tpu.memory_space<vmem>>, vector<1x32xf32>
    %224 = vector.broadcast %223 : vector<1x32xf32> to vector<16x32xf32>
    %225 = arith.addf %222, %224 : vector<16x32xf32>
    %cst_83 = arith.constant 0.353553385 : f32
    %226 = vector.broadcast %cst_83 : f32 to vector<16x32xf32>
    %227 = arith.mulf %225, %226 : vector<16x32xf32>
    %228 = arith.addf %1, %3 : vector<32x32xf32>
    %229 = arith.truncf %228 : vector<32x32xf32> to vector<32x32xbf16>
    %c0_84 = arith.constant 0 : index
    %c0_85 = arith.constant 0 : index
    %230 = vector.load %arg12[%c0_84, %c0_85] : memref<32x32xbf16, #tpu.memory_space<vmem>>, vector<32x32xbf16>
    %cst_86 = arith.constant dense<0.000000e+00> : vector<32x32xf32>
    %231 = tpu.matmul %229, %230, %cst_86 {dimension_numbers = #tpu.dot_dimension_numbers<[1], [0], [0], [1], [0, 0, 1, 1], [], []>} : vector<32x32xbf16>, vector<32x32xbf16>, vector<32x32xf32> -> vector<32x32xf32>
    %c0_87 = arith.constant 0 : index
    %c0_88 = arith.constant 0 : index
    %232 = vector.load %arg13[%c0_87, %c0_88] : memref<1x32xf32, #tpu.memory_space<vmem>>, vector<1x32xf32>
    %233 = vector.broadcast %232 : vector<1x32xf32> to vector<32x32xf32>
    %234 = arith.addf %231, %233 : vector<32x32xf32>
    %235 = arith.truncf %1 : vector<32x32xf32> to vector<32x32xbf16>
    %c0_89 = arith.constant 0 : index
    %c0_90 = arith.constant 0 : index
    %236 = vector.load %arg14[%c0_89, %c0_90] : memref<32x32xbf16, #tpu.memory_space<vmem>>, vector<32x32xbf16>
    %cst_91 = arith.constant dense<0.000000e+00> : vector<32x32xf32>
    %237 = tpu.matmul %235, %236, %cst_91 {dimension_numbers = #tpu.dot_dimension_numbers<[1], [0], [0], [1], [0, 0, 1, 1], [], []>} : vector<32x32xbf16>, vector<32x32xbf16>, vector<32x32xf32> -> vector<32x32xf32>
    %c0_92 = arith.constant 0 : index
    %c0_93 = arith.constant 0 : index
    %238 = vector.load %arg15[%c0_92, %c0_93] : memref<1x32xf32, #tpu.memory_space<vmem>>, vector<1x32xf32>
    %239 = vector.broadcast %238 : vector<1x32xf32> to vector<32x32xf32>
    %240 = arith.addf %237, %239 : vector<32x32xf32>
    %241 = vector.extract_strided_slice %227 {offsets = [0, 0], sizes = [8, 32], strides = [1, 1]} : vector<16x32xf32> to vector<8x32xf32>
    %242 = vector.extract_strided_slice %234 {offsets = [0, 0], sizes = [16, 32], strides = [1, 1]} : vector<32x32xf32> to vector<16x32xf32>
    %243 = vector.extract_strided_slice %240 {offsets = [0, 0], sizes = [16, 32], strides = [1, 1]} : vector<32x32xf32> to vector<16x32xf32>
    %244 = vector.extract_strided_slice %241 {offsets = [0, 0], sizes = [8, 8], strides = [1, 1]} : vector<8x32xf32> to vector<8x8xf32>
    %245 = arith.truncf %244 : vector<8x8xf32> to vector<8x8xbf16>
    %246 = vector.extract_strided_slice %242 {offsets = [0, 0], sizes = [16, 8], strides = [1, 1]} : vector<16x32xf32> to vector<16x8xf32>
    %247 = arith.truncf %246 : vector<16x8xf32> to vector<16x8xbf16>
    %cst_94 = arith.constant dense<0.000000e+00> : vector<8x16xf32>
    %248 = tpu.matmul %245, %247, %cst_94 {dimension_numbers = #tpu.dot_dimension_numbers<[1], [1], [0], [0], [0, 0, 1, 0], [], []>} : vector<8x8xbf16>, vector<16x8xbf16>, vector<8x16xf32> -> vector<8x16xf32>
    %cst_95 = arith.constant dense<0xFF800000> : vector<8xf32>
    %249 = vector.multi_reduction <maximumf>, %248, %cst_95 [1] : vector<8x16xf32> to vector<8xf32>
    %250 = vector.shape_cast %249 : vector<8xf32> to vector<8x1xf32>
    %251 = vector.broadcast %250 : vector<8x1xf32> to vector<8x16xf32>
    %252 = arith.subf %248, %251 : vector<8x16xf32>
    %253 = math.exp %252 : vector<8x16xf32>
    %cst_96 = arith.constant dense<0.000000e+00> : vector<8xf32>
    %254 = vector.multi_reduction <add>, %253, %cst_96 [1] : vector<8x16xf32> to vector<8xf32>
    %255 = vector.shape_cast %254 : vector<8xf32> to vector<8x1xf32>
    %256 = tpu.reciprocal %255 {approx = true} : vector<8x1xf32> -> vector<8x1xf32>
    %257 = vector.broadcast %256 : vector<8x1xf32> to vector<8x16xf32>
    %258 = arith.mulf %253, %257 : vector<8x16xf32>
    %259 = arith.truncf %258 : vector<8x16xf32> to vector<8x16xbf16>
    %260 = vector.extract_strided_slice %243 {offsets = [0, 0], sizes = [16, 8], strides = [1, 1]} : vector<16x32xf32> to vector<16x8xf32>
    %261 = arith.truncf %260 : vector<16x8xf32> to vector<16x8xbf16>
    %cst_97 = arith.constant dense<0.000000e+00> : vector<8x8xf32>
    %262 = tpu.matmul %259, %261, %cst_97 {dimension_numbers = #tpu.dot_dimension_numbers<[1], [0], [0], [1], [0, 0, 1, 1], [], []>} : vector<8x16xbf16>, vector<16x8xbf16>, vector<8x8xf32> -> vector<8x8xf32>
    %c0_98 = arith.constant 0 : index
    %c0_99 = arith.constant 0 : index
    %263 = vector.load %arg29[%c0_98, %c0_99] : memref<16x32xf32, #tpu.memory_space<vmem>>, vector<8x8xf32>
    tpu.vector_store %arg29[%c0_98, %c0_99], %262 {strides = array<i32>} : memref<16x32xf32, #tpu.memory_space<vmem>>, vector<8x8xf32>,
    %264 = vector.extract_strided_slice %241 {offsets = [0, 8], sizes = [8, 8], strides = [1, 1]} : vector<8x32xf32> to vector<8x8xf32>
    %265 = arith.truncf %264 : vector<8x8xf32> to vector<8x8xbf16>
    %266 = vector.extract_strided_slice %242 {offsets = [0, 8], sizes = [16, 8], strides = [1, 1]} : vector<16x32xf32> to vector<16x8xf32>
    %267 = arith.truncf %266 : vector<16x8xf32> to vector<16x8xbf16>
    %cst_100 = arith.constant dense<0.000000e+00> : vector<8x16xf32>
    %268 = tpu.matmul %265, %267, %cst_100 {dimension_numbers = #tpu.dot_dimension_numbers<[1], [1], [0], [0], [0, 0, 1, 0], [], []>} : vector<8x8xbf16>, vector<16x8xbf16>, vector<8x16xf32> -> vector<8x16xf32>
    %cst_101 = arith.constant dense<0xFF800000> : vector<8xf32>
    %269 = vector.multi_reduction <maximumf>, %268, %cst_101 [1] : vector<8x16xf32> to vector<8xf32>
    %270 = vector.shape_cast %269 : vector<8xf32> to vector<8x1xf32>
    %271 = vector.broadcast %270 : vector<8x1xf32> to vector<8x16xf32>
    %272 = arith.subf %268, %271 : vector<8x16xf32>
    %273 = math.exp %272 : vector<8x16xf32>
    %cst_102 = arith.constant dense<0.000000e+00> : vector<8xf32>
    %274 = vector.multi_reduction <add>, %273, %cst_102 [1] : vector<8x16xf32> to vector<8xf32>
    %275 = vector.shape_cast %274 : vector<8xf32> to vector<8x1xf32>
    %276 = tpu.reciprocal %275 {approx = true} : vector<8x1xf32> -> vector<8x1xf32>
    %277 = vector.broadcast %276 : vector<8x1xf32> to vector<8x16xf32>
    %278 = arith.mulf %273, %277 : vector<8x16xf32>
    %279 = arith.truncf %278 : vector<8x16xf32> to vector<8x16xbf16>
    %280 = vector.extract_strided_slice %243 {offsets = [0, 8], sizes = [16, 8], strides = [1, 1]} : vector<16x32xf32> to vector<16x8xf32>
    %281 = arith.truncf %280 : vector<16x8xf32> to vector<16x8xbf16>
    %cst_103 = arith.constant dense<0.000000e+00> : vector<8x8xf32>
    %282 = tpu.matmul %279, %281, %cst_103 {dimension_numbers = #tpu.dot_dimension_numbers<[1], [0], [0], [1], [0, 0, 1, 1], [], []>} : vector<8x16xbf16>, vector<16x8xbf16>, vector<8x8xf32> -> vector<8x8xf32>
    %c0_104 = arith.constant 0 : index
    %c8_105 = arith.constant 8 : index
    %283 = vector.load %arg29[%c0_104, %c8_105] : memref<16x32xf32, #tpu.memory_space<vmem>>, vector<8x8xf32>
    tpu.vector_store %arg29[%c0_104, %c8_105], %282 {strides = array<i32>} : memref<16x32xf32, #tpu.memory_space<vmem>>, vector<8x8xf32>,
    %284 = vector.extract_strided_slice %241 {offsets = [0, 16], sizes = [8, 8], strides = [1, 1]} : vector<8x32xf32> to vector<8x8xf32>
    %285 = arith.truncf %284 : vector<8x8xf32> to vector<8x8xbf16>
    %286 = vector.extract_strided_slice %242 {offsets = [0, 16], sizes = [16, 8], strides = [1, 1]} : vector<16x32xf32> to vector<16x8xf32>
    %287 = arith.truncf %286 : vector<16x8xf32> to vector<16x8xbf16>
    %cst_106 = arith.constant dense<0.000000e+00> : vector<8x16xf32>
    %288 = tpu.matmul %285, %287, %cst_106 {dimension_numbers = #tpu.dot_dimension_numbers<[1], [1], [0], [0], [0, 0, 1, 0], [], []>} : vector<8x8xbf16>, vector<16x8xbf16>, vector<8x16xf32> -> vector<8x16xf32>
    %cst_107 = arith.constant dense<0xFF800000> : vector<8xf32>
    %289 = vector.multi_reduction <maximumf>, %288, %cst_107 [1] : vector<8x16xf32> to vector<8xf32>
    %290 = vector.shape_cast %289 : vector<8xf32> to vector<8x1xf32>
    %291 = vector.broadcast %290 : vector<8x1xf32> to vector<8x16xf32>
    %292 = arith.subf %288, %291 : vector<8x16xf32>
    %293 = math.exp %292 : vector<8x16xf32>
    %cst_108 = arith.constant dense<0.000000e+00> : vector<8xf32>
    %294 = vector.multi_reduction <add>, %293, %cst_108 [1] : vector<8x16xf32> to vector<8xf32>
    %295 = vector.shape_cast %294 : vector<8xf32> to vector<8x1xf32>
    %296 = tpu.reciprocal %295 {approx = true} : vector<8x1xf32> -> vector<8x1xf32>
    %297 = vector.broadcast %296 : vector<8x1xf32> to vector<8x16xf32>
    %298 = arith.mulf %293, %297 : vector<8x16xf32>
    %299 = arith.truncf %298 : vector<8x16xf32> to vector<8x16xbf16>
    %300 = vector.extract_strided_slice %243 {offsets = [0, 16], sizes = [16, 8], strides = [1, 1]} : vector<16x32xf32> to vector<16x8xf32>
    %301 = arith.truncf %300 : vector<16x8xf32> to vector<16x8xbf16>
    %cst_109 = arith.constant dense<0.000000e+00> : vector<8x8xf32>
    %302 = tpu.matmul %299, %301, %cst_109 {dimension_numbers = #tpu.dot_dimension_numbers<[1], [0], [0], [1], [0, 0, 1, 1], [], []>} : vector<8x16xbf16>, vector<16x8xbf16>, vector<8x8xf32> -> vector<8x8xf32>
    %c0_110 = arith.constant 0 : index
    %c16_111 = arith.constant 16 : index
    %303 = vector.load %arg29[%c0_110, %c16_111] : memref<16x32xf32, #tpu.memory_space<vmem>>, vector<8x8xf32>
    tpu.vector_store %arg29[%c0_110, %c16_111], %302 {strides = array<i32>} : memref<16x32xf32, #tpu.memory_space<vmem>>, vector<8x8xf32>,
    %304 = vector.extract_strided_slice %241 {offsets = [0, 24], sizes = [8, 8], strides = [1, 1]} : vector<8x32xf32> to vector<8x8xf32>
    %305 = arith.truncf %304 : vector<8x8xf32> to vector<8x8xbf16>
    %306 = vector.extract_strided_slice %242 {offsets = [0, 24], sizes = [16, 8], strides = [1, 1]} : vector<16x32xf32> to vector<16x8xf32>
    %307 = arith.truncf %306 : vector<16x8xf32> to vector<16x8xbf16>
    %cst_112 = arith.constant dense<0.000000e+00> : vector<8x16xf32>
    %308 = tpu.matmul %305, %307, %cst_112 {dimension_numbers = #tpu.dot_dimension_numbers<[1], [1], [0], [0], [0, 0, 1, 0], [], []>} : vector<8x8xbf16>, vector<16x8xbf16>, vector<8x16xf32> -> vector<8x16xf32>
    %cst_113 = arith.constant dense<0xFF800000> : vector<8xf32>
    %309 = vector.multi_reduction <maximumf>, %308, %cst_113 [1] : vector<8x16xf32> to vector<8xf32>
    %310 = vector.shape_cast %309 : vector<8xf32> to vector<8x1xf32>
    %311 = vector.broadcast %310 : vector<8x1xf32> to vector<8x16xf32>
    %312 = arith.subf %308, %311 : vector<8x16xf32>
    %313 = math.exp %312 : vector<8x16xf32>
    %cst_114 = arith.constant dense<0.000000e+00> : vector<8xf32>
    %314 = vector.multi_reduction <add>, %313, %cst_114 [1] : vector<8x16xf32> to vector<8xf32>
    %315 = vector.shape_cast %314 : vector<8xf32> to vector<8x1xf32>
    %316 = tpu.reciprocal %315 {approx = true} : vector<8x1xf32> -> vector<8x1xf32>
    %317 = vector.broadcast %316 : vector<8x1xf32> to vector<8x16xf32>
    %318 = arith.mulf %313, %317 : vector<8x16xf32>
    %319 = arith.truncf %318 : vector<8x16xf32> to vector<8x16xbf16>
    %320 = vector.extract_strided_slice %243 {offsets = [0, 24], sizes = [16, 8], strides = [1, 1]} : vector<16x32xf32> to vector<16x8xf32>
    %321 = arith.truncf %320 : vector<16x8xf32> to vector<16x8xbf16>
    %cst_115 = arith.constant dense<0.000000e+00> : vector<8x8xf32>
    %322 = tpu.matmul %319, %321, %cst_115 {dimension_numbers = #tpu.dot_dimension_numbers<[1], [0], [0], [1], [0, 0, 1, 1], [], []>} : vector<8x16xbf16>, vector<16x8xbf16>, vector<8x8xf32> -> vector<8x8xf32>
    %c0_116 = arith.constant 0 : index
    %c24_117 = arith.constant 24 : index
    %323 = vector.load %arg29[%c0_116, %c24_117] : memref<16x32xf32, #tpu.memory_space<vmem>>, vector<8x8xf32>
    tpu.vector_store %arg29[%c0_116, %c24_117], %322 {strides = array<i32>} : memref<16x32xf32, #tpu.memory_space<vmem>>, vector<8x8xf32>,
    %324 = vector.extract_strided_slice %227 {offsets = [8, 0], sizes = [8, 32], strides = [1, 1]} : vector<16x32xf32> to vector<8x32xf32>
    %325 = vector.extract_strided_slice %234 {offsets = [16, 0], sizes = [16, 32], strides = [1, 1]} : vector<32x32xf32> to vector<16x32xf32>
    %326 = vector.extract_strided_slice %240 {offsets = [16, 0], sizes = [16, 32], strides = [1, 1]} : vector<32x32xf32> to vector<16x32xf32>
    %327 = vector.extract_strided_slice %324 {offsets = [0, 0], sizes = [8, 8], strides = [1, 1]} : vector<8x32xf32> to vector<8x8xf32>
    %328 = arith.truncf %327 : vector<8x8xf32> to vector<8x8xbf16>
    %329 = vector.extract_strided_slice %325 {offsets = [0, 0], sizes = [16, 8], strides = [1, 1]} : vector<16x32xf32> to vector<16x8xf32>
    %330 = arith.truncf %329 : vector<16x8xf32> to vector<16x8xbf16>
    %cst_118 = arith.constant dense<0.000000e+00> : vector<8x16xf32>
    %331 = tpu.matmul %328, %330, %cst_118 {dimension_numbers = #tpu.dot_dimension_numbers<[1], [1], [0], [0], [0, 0, 1, 0], [], []>} : vector<8x8xbf16>, vector<16x8xbf16>, vector<8x16xf32> -> vector<8x16xf32>
    %cst_119 = arith.constant dense<0xFF800000> : vector<8xf32>
    %332 = vector.multi_reduction <maximumf>, %331, %cst_119 [1] : vector<8x16xf32> to vector<8xf32>
    %333 = vector.shape_cast %332 : vector<8xf32> to vector<8x1xf32>
    %334 = vector.broadcast %333 : vector<8x1xf32> to vector<8x16xf32>
    %335 = arith.subf %331, %334 : vector<8x16xf32>
    %336 = math.exp %335 : vector<8x16xf32>
    %cst_120 = arith.constant dense<0.000000e+00> : vector<8xf32>
    %337 = vector.multi_reduction <add>, %336, %cst_120 [1] : vector<8x16xf32> to vector<8xf32>
    %338 = vector.shape_cast %337 : vector<8xf32> to vector<8x1xf32>
    %339 = tpu.reciprocal %338 {approx = true} : vector<8x1xf32> -> vector<8x1xf32>
    %340 = vector.broadcast %339 : vector<8x1xf32> to vector<8x16xf32>
    %341 = arith.mulf %336, %340 : vector<8x16xf32>
    %342 = arith.truncf %341 : vector<8x16xf32> to vector<8x16xbf16>
    %343 = vector.extract_strided_slice %326 {offsets = [0, 0], sizes = [16, 8], strides = [1, 1]} : vector<16x32xf32> to vector<16x8xf32>
    %344 = arith.truncf %343 : vector<16x8xf32> to vector<16x8xbf16>
    %cst_121 = arith.constant dense<0.000000e+00> : vector<8x8xf32>
    %345 = tpu.matmul %342, %344, %cst_121 {dimension_numbers = #tpu.dot_dimension_numbers<[1], [0], [0], [1], [0, 0, 1, 1], [], []>} : vector<8x16xbf16>, vector<16x8xbf16>, vector<8x8xf32> -> vector<8x8xf32>
    %c8_122 = arith.constant 8 : index
    %c0_123 = arith.constant 0 : index
    %346 = vector.load %arg29[%c8_122, %c0_123] : memref<16x32xf32, #tpu.memory_space<vmem>>, vector<8x8xf32>
    tpu.vector_store %arg29[%c8_122, %c0_123], %345 {strides = array<i32>} : memref<16x32xf32, #tpu.memory_space<vmem>>, vector<8x8xf32>,
    %347 = vector.extract_strided_slice %324 {offsets = [0, 8], sizes = [8, 8], strides = [1, 1]} : vector<8x32xf32> to vector<8x8xf32>
    %348 = arith.truncf %347 : vector<8x8xf32> to vector<8x8xbf16>
    %349 = vector.extract_strided_slice %325 {offsets = [0, 8], sizes = [16, 8], strides = [1, 1]} : vector<16x32xf32> to vector<16x8xf32>
    %350 = arith.truncf %349 : vector<16x8xf32> to vector<16x8xbf16>
    %cst_124 = arith.constant dense<0.000000e+00> : vector<8x16xf32>
    %351 = tpu.matmul %348, %350, %cst_124 {dimension_numbers = #tpu.dot_dimension_numbers<[1], [1], [0], [0], [0, 0, 1, 0], [], []>} : vector<8x8xbf16>, vector<16x8xbf16>, vector<8x16xf32> -> vector<8x16xf32>
    %cst_125 = arith.constant dense<0xFF800000> : vector<8xf32>
    %352 = vector.multi_reduction <maximumf>, %351, %cst_125 [1] : vector<8x16xf32> to vector<8xf32>
    %353 = vector.shape_cast %352 : vector<8xf32> to vector<8x1xf32>
    %354 = vector.broadcast %353 : vector<8x1xf32> to vector<8x16xf32>
    %355 = arith.subf %351, %354 : vector<8x16xf32>
    %356 = math.exp %355 : vector<8x16xf32>
    %cst_126 = arith.constant dense<0.000000e+00> : vector<8xf32>
    %357 = vector.multi_reduction <add>, %356, %cst_126 [1] : vector<8x16xf32> to vector<8xf32>
    %358 = vector.shape_cast %357 : vector<8xf32> to vector<8x1xf32>
    %359 = tpu.reciprocal %358 {approx = true} : vector<8x1xf32> -> vector<8x1xf32>
    %360 = vector.broadcast %359 : vector<8x1xf32> to vector<8x16xf32>
    %361 = arith.mulf %356, %360 : vector<8x16xf32>
    %362 = arith.truncf %361 : vector<8x16xf32> to vector<8x16xbf16>
    %363 = vector.extract_strided_slice %326 {offsets = [0, 8], sizes = [16, 8], strides = [1, 1]} : vector<16x32xf32> to vector<16x8xf32>
    %364 = arith.truncf %363 : vector<16x8xf32> to vector<16x8xbf16>
    %cst_127 = arith.constant dense<0.000000e+00> : vector<8x8xf32>
    %365 = tpu.matmul %362, %364, %cst_127 {dimension_numbers = #tpu.dot_dimension_numbers<[1], [0], [0], [1], [0, 0, 1, 1], [], []>} : vector<8x16xbf16>, vector<16x8xbf16>, vector<8x8xf32> -> vector<8x8xf32>
    %c8_128 = arith.constant 8 : index
    %c8_129 = arith.constant 8 : index
    %366 = vector.load %arg29[%c8_128, %c8_129] : memref<16x32xf32, #tpu.memory_space<vmem>>, vector<8x8xf32>
    tpu.vector_store %arg29[%c8_128, %c8_129], %365 {strides = array<i32>} : memref<16x32xf32, #tpu.memory_space<vmem>>, vector<8x8xf32>,
    %367 = vector.extract_strided_slice %324 {offsets = [0, 16], sizes = [8, 8], strides = [1, 1]} : vector<8x32xf32> to vector<8x8xf32>
    %368 = arith.truncf %367 : vector<8x8xf32> to vector<8x8xbf16>
    %369 = vector.extract_strided_slice %325 {offsets = [0, 16], sizes = [16, 8], strides = [1, 1]} : vector<16x32xf32> to vector<16x8xf32>
    %370 = arith.truncf %369 : vector<16x8xf32> to vector<16x8xbf16>
    %cst_130 = arith.constant dense<0.000000e+00> : vector<8x16xf32>
    %371 = tpu.matmul %368, %370, %cst_130 {dimension_numbers = #tpu.dot_dimension_numbers<[1], [1], [0], [0], [0, 0, 1, 0], [], []>} : vector<8x8xbf16>, vector<16x8xbf16>, vector<8x16xf32> -> vector<8x16xf32>
    %cst_131 = arith.constant dense<0xFF800000> : vector<8xf32>
    %372 = vector.multi_reduction <maximumf>, %371, %cst_131 [1] : vector<8x16xf32> to vector<8xf32>
    %373 = vector.shape_cast %372 : vector<8xf32> to vector<8x1xf32>
    %374 = vector.broadcast %373 : vector<8x1xf32> to vector<8x16xf32>
    %375 = arith.subf %371, %374 : vector<8x16xf32>
    %376 = math.exp %375 : vector<8x16xf32>
    %cst_132 = arith.constant dense<0.000000e+00> : vector<8xf32>
    %377 = vector.multi_reduction <add>, %376, %cst_132 [1] : vector<8x16xf32> to vector<8xf32>
    %378 = vector.shape_cast %377 : vector<8xf32> to vector<8x1xf32>
    %379 = tpu.reciprocal %378 {approx = true} : vector<8x1xf32> -> vector<8x1xf32>
    %380 = vector.broadcast %379 : vector<8x1xf32> to vector<8x16xf32>
    %381 = arith.mulf %376, %380 : vector<8x16xf32>
    %382 = arith.truncf %381 : vector<8x16xf32> to vector<8x16xbf16>
    %383 = vector.extract_strided_slice %326 {offsets = [0, 16], sizes = [16, 8], strides = [1, 1]} : vector<16x32xf32> to vector<16x8xf32>
    %384 = arith.truncf %383 : vector<16x8xf32> to vector<16x8xbf16>
    %cst_133 = arith.constant dense<0.000000e+00> : vector<8x8xf32>
    %385 = tpu.matmul %382, %384, %cst_133 {dimension_numbers = #tpu.dot_dimension_numbers<[1], [0], [0], [1], [0, 0, 1, 1], [], []>} : vector<8x16xbf16>, vector<16x8xbf16>, vector<8x8xf32> -> vector<8x8xf32>
    %c8_134 = arith.constant 8 : index
    %c16_135 = arith.constant 16 : index
    %386 = vector.load %arg29[%c8_134, %c16_135] : memref<16x32xf32, #tpu.memory_space<vmem>>, vector<8x8xf32>
    tpu.vector_store %arg29[%c8_134, %c16_135], %385 {strides = array<i32>} : memref<16x32xf32, #tpu.memory_space<vmem>>, vector<8x8xf32>,
    %387 = vector.extract_strided_slice %324 {offsets = [0, 24], sizes = [8, 8], strides = [1, 1]} : vector<8x32xf32> to vector<8x8xf32>
    %388 = arith.truncf %387 : vector<8x8xf32> to vector<8x8xbf16>
    %389 = vector.extract_strided_slice %325 {offsets = [0, 24], sizes = [16, 8], strides = [1, 1]} : vector<16x32xf32> to vector<16x8xf32>
    %390 = arith.truncf %389 : vector<16x8xf32> to vector<16x8xbf16>
    %cst_136 = arith.constant dense<0.000000e+00> : vector<8x16xf32>
    %391 = tpu.matmul %388, %390, %cst_136 {dimension_numbers = #tpu.dot_dimension_numbers<[1], [1], [0], [0], [0, 0, 1, 0], [], []>} : vector<8x8xbf16>, vector<16x8xbf16>, vector<8x16xf32> -> vector<8x16xf32>
    %cst_137 = arith.constant dense<0xFF800000> : vector<8xf32>
    %392 = vector.multi_reduction <maximumf>, %391, %cst_137 [1] : vector<8x16xf32> to vector<8xf32>
    %393 = vector.shape_cast %392 : vector<8xf32> to vector<8x1xf32>
    %394 = vector.broadcast %393 : vector<8x1xf32> to vector<8x16xf32>
    %395 = arith.subf %391, %394 : vector<8x16xf32>
    %396 = math.exp %395 : vector<8x16xf32>
    %cst_138 = arith.constant dense<0.000000e+00> : vector<8xf32>
    %397 = vector.multi_reduction <add>, %396, %cst_138 [1] : vector<8x16xf32> to vector<8xf32>
    %398 = vector.shape_cast %397 : vector<8xf32> to vector<8x1xf32>
    %399 = tpu.reciprocal %398 {approx = true} : vector<8x1xf32> -> vector<8x1xf32>
    %400 = vector.broadcast %399 : vector<8x1xf32> to vector<8x16xf32>
    %401 = arith.mulf %396, %400 : vector<8x16xf32>
    %402 = arith.truncf %401 : vector<8x16xf32> to vector<8x16xbf16>
    %403 = vector.extract_strided_slice %326 {offsets = [0, 24], sizes = [16, 8], strides = [1, 1]} : vector<16x32xf32> to vector<16x8xf32>
    %404 = arith.truncf %403 : vector<16x8xf32> to vector<16x8xbf16>
    %cst_139 = arith.constant dense<0.000000e+00> : vector<8x8xf32>
    %405 = tpu.matmul %402, %404, %cst_139 {dimension_numbers = #tpu.dot_dimension_numbers<[1], [0], [0], [1], [0, 0, 1, 1], [], []>} : vector<8x16xbf16>, vector<16x8xbf16>, vector<8x8xf32> -> vector<8x8xf32>
    %c8_140 = arith.constant 8 : index
    %c24_141 = arith.constant 24 : index
    %406 = vector.load %arg29[%c8_140, %c24_141] : memref<16x32xf32, #tpu.memory_space<vmem>>, vector<8x8xf32>
    tpu.vector_store %arg29[%c8_140, %c24_141], %405 {strides = array<i32>} : memref<16x32xf32, #tpu.memory_space<vmem>>, vector<8x8xf32>,
    %c0_142 = arith.constant 0 : index
    %c0_143 = arith.constant 0 : index
    %407 = vector.load %arg29[%c0_142, %c0_143] : memref<16x32xf32, #tpu.memory_space<vmem>>, vector<16x32xf32>
    %408 = arith.truncf %407 : vector<16x32xf32> to vector<16x32xbf16>
    %c0_144 = arith.constant 0 : index
    %c0_145 = arith.constant 0 : index
    %409 = vector.load %arg16[%c0_144, %c0_145] : memref<32x32xbf16, #tpu.memory_space<vmem>>, vector<32x32xbf16>
    %cst_146 = arith.constant dense<0.000000e+00> : vector<16x32xf32>
    %410 = tpu.matmul %408, %409, %cst_146 {dimension_numbers = #tpu.dot_dimension_numbers<[1], [0], [0], [1], [0, 0, 1, 1], [], []>} : vector<16x32xbf16>, vector<32x32xbf16>, vector<16x32xf32> -> vector<16x32xf32>
    %411 = arith.addf %218, %410 : vector<16x32xf32>
    %c0_147 = arith.constant 0 : index
    %c0_148 = arith.constant 0 : index
    %412 = vector.load %arg17[%c0_147, %c0_148] : memref<1x32xf32, #tpu.memory_space<vmem>>, vector<1x32xf32>
    %413 = vector.broadcast %412 : vector<1x32xf32> to vector<16x32xf32>
    %414 = arith.addf %411, %413 : vector<16x32xf32>
    %cst_149 = arith.constant dense<0.000000e+00> : vector<16xf32>
    %415 = vector.multi_reduction <add>, %414, %cst_149 [1] : vector<16x32xf32> to vector<16xf32>
    %416 = vector.shape_cast %415 : vector<16xf32> to vector<16x1xf32>
    %cst_150 = arith.constant 3.200000e+01 : f32
    %417 = vector.broadcast %cst_150 : f32 to vector<16x1xf32>
    %418 = arith.divf %416, %417 : vector<16x1xf32>
    %419 = vector.broadcast %418 : vector<16x1xf32> to vector<16x32xf32>
    %420 = arith.subf %414, %419 : vector<16x32xf32>
    %421 = arith.mulf %420, %420 : vector<16x32xf32>
    %cst_151 = arith.constant dense<0.000000e+00> : vector<16xf32>
    %422 = vector.multi_reduction <add>, %421, %cst_151 [1] : vector<16x32xf32> to vector<16xf32>
    %423 = vector.shape_cast %422 : vector<16xf32> to vector<16x1xf32>
    %cst_152 = arith.constant 3.200000e+01 : f32
    %424 = vector.broadcast %cst_152 : f32 to vector<16x1xf32>
    %425 = arith.divf %423, %424 : vector<16x1xf32>
    %426 = vector.broadcast %418 : vector<16x1xf32> to vector<16x32xf32>
    %427 = arith.subf %414, %426 : vector<16x32xf32>
    %cst_153 = arith.constant 9.99999974E-6 : f32
    %428 = vector.broadcast %cst_153 : f32 to vector<16x1xf32>
    %429 = arith.addf %425, %428 : vector<16x1xf32>
    %430 = math.rsqrt %429 : vector<16x1xf32>
    %431 = vector.broadcast %430 : vector<16x1xf32> to vector<16x32xf32>
    %432 = arith.mulf %427, %431 : vector<16x32xf32>
    %c0_154 = arith.constant 0 : index
    %c0_155 = arith.constant 0 : index
    %433 = vector.load %arg24[%c0_154, %c0_155] : memref<1x32xf32, #tpu.memory_space<vmem>>, vector<1x32xf32>
    %434 = vector.broadcast %433 : vector<1x32xf32> to vector<16x32xf32>
    %435 = arith.mulf %432, %434 : vector<16x32xf32>
    %c0_156 = arith.constant 0 : index
    %c0_157 = arith.constant 0 : index
    %436 = vector.load %arg25[%c0_156, %c0_157] : memref<1x32xf32, #tpu.memory_space<vmem>>, vector<1x32xf32>
    %437 = vector.broadcast %436 : vector<1x32xf32> to vector<16x32xf32>
    %438 = arith.addf %435, %437 : vector<16x32xf32>
    %439 = arith.truncf %438 : vector<16x32xf32> to vector<16x32xbf16>
    %c0_158 = arith.constant 0 : index
    %c0_159 = arith.constant 0 : index
    %440 = vector.load %arg18[%c0_158, %c0_159] : memref<32x64xbf16, #tpu.memory_space<vmem>>, vector<32x64xbf16>
    %cst_160 = arith.constant dense<0.000000e+00> : vector<16x64xf32>
    %441 = tpu.matmul %439, %440, %cst_160 {dimension_numbers = #tpu.dot_dimension_numbers<[1], [0], [0], [1], [0, 0, 1, 1], [], []>} : vector<16x32xbf16>, vector<32x64xbf16>, vector<16x64xf32> -> vector<16x64xf32>
    %c0_161 = arith.constant 0 : index
    %c0_162 = arith.constant 0 : index
    %442 = vector.load %arg19[%c0_161, %c0_162] : memref<1x64xf32, #tpu.memory_space<vmem>>, vector<1x64xf32>
    %443 = vector.broadcast %442 : vector<1x64xf32> to vector<16x64xf32>
    %444 = arith.addf %441, %443 : vector<16x64xf32>
    %cst_163 = arith.constant 0.000000e+00 : f32
    %445 = vector.broadcast %cst_163 : f32 to vector<16x64xf32>
    %446 = arith.maximumf %444, %445 : vector<16x64xf32>
    %447 = arith.truncf %446 : vector<16x64xf32> to vector<16x64xbf16>
    %c0_164 = arith.constant 0 : index
    %c0_165 = arith.constant 0 : index
    %448 = vector.load %arg20[%c0_164, %c0_165] : memref<64x32xbf16, #tpu.memory_space<vmem>>, vector<64x32xbf16>
    %cst_166 = arith.constant dense<0.000000e+00> : vector<16x32xf32>
    %449 = tpu.matmul %447, %448, %cst_166 {dimension_numbers = #tpu.dot_dimension_numbers<[1], [0], [0], [1], [0, 0, 1, 1], [], []>} : vector<16x64xbf16>, vector<64x32xbf16>, vector<16x32xf32> -> vector<16x32xf32>
    %c0_167 = arith.constant 0 : index
    %c0_168 = arith.constant 0 : index
    %450 = vector.load %arg21[%c0_167, %c0_168] : memref<1x32xf32, #tpu.memory_space<vmem>>, vector<1x32xf32>
    %451 = vector.broadcast %450 : vector<1x32xf32> to vector<16x32xf32>
    %452 = arith.addf %449, %451 : vector<16x32xf32>
    %453 = arith.addf %438, %452 : vector<16x32xf32>
    %cst_169 = arith.constant dense<0.000000e+00> : vector<16xf32>
    %454 = vector.multi_reduction <add>, %453, %cst_169 [1] : vector<16x32xf32> to vector<16xf32>
    %455 = vector.shape_cast %454 : vector<16xf32> to vector<16x1xf32>
    %cst_170 = arith.constant 3.200000e+01 : f32
    %456 = vector.broadcast %cst_170 : f32 to vector<16x1xf32>
    %457 = arith.divf %455, %456 : vector<16x1xf32>
    %458 = vector.broadcast %457 : vector<16x1xf32> to vector<16x32xf32>
    %459 = arith.subf %453, %458 : vector<16x32xf32>
    %460 = arith.mulf %459, %459 : vector<16x32xf32>
    %cst_171 = arith.constant dense<0.000000e+00> : vector<16xf32>
    %461 = vector.multi_reduction <add>, %460, %cst_171 [1] : vector<16x32xf32> to vector<16xf32>
    %462 = vector.shape_cast %461 : vector<16xf32> to vector<16x1xf32>
    %cst_172 = arith.constant 3.200000e+01 : f32
    %463 = vector.broadcast %cst_172 : f32 to vector<16x1xf32>
    %464 = arith.divf %462, %463 : vector<16x1xf32>
    %465 = vector.broadcast %457 : vector<16x1xf32> to vector<16x32xf32>
    %466 = arith.subf %453, %465 : vector<16x32xf32>
    %cst_173 = arith.constant 9.99999974E-6 : f32
    %467 = vector.broadcast %cst_173 : f32 to vector<16x1xf32>
    %468 = arith.addf %464, %467 : vector<16x1xf32>
    %469 = math.rsqrt %468 : vector<16x1xf32>
    %470 = vector.broadcast %469 : vector<16x1xf32> to vector<16x32xf32>
    %471 = arith.mulf %466, %470 : vector<16x32xf32>
    %c0_174 = arith.constant 0 : index
    %c0_175 = arith.constant 0 : index
    %472 = vector.load %arg26[%c0_174, %c0_175] : memref<1x32xf32, #tpu.memory_space<vmem>>, vector<1x32xf32>
    %473 = vector.broadcast %472 : vector<1x32xf32> to vector<16x32xf32>
    %474 = arith.mulf %471, %473 : vector<16x32xf32>
    %c0_176 = arith.constant 0 : index
    %c0_177 = arith.constant 0 : index
    %475 = vector.load %arg27[%c0_176, %c0_177] : memref<1x32xf32, #tpu.memory_space<vmem>>, vector<1x32xf32>
    %476 = vector.broadcast %475 : vector<1x32xf32> to vector<16x32xf32>
    %477 = arith.addf %474, %476 : vector<16x32xf32>
    %c0_178 = arith.constant 0 : index
    %c0_179 = arith.constant 0 : index
    %478 = vector.load %arg28[%c0_178, %c0_179] : memref<16x32xf32, #tpu.memory_space<vmem>>, vector<16x32xf32>
    tpu.vector_store %arg28[%c0_178, %c0_179], %477 {strides = array<i32>} : memref<16x32xf32, #tpu.memory_space<vmem>>, vector<16x32xf32>,
    return
  }
}

</mosaic_0001>

<bundles_post_ra>
// kernel: transformer_decoder_layer.1
= control target key start
LH: loop header
LB: loop body
LE: loop exit
PB: predicated region body
PF: predicated region fallthrough
CT: control target
= control target key end

     0   :  { %v3288_v0 = vmov 0.0   ;;  %vm3289_vm0 = vmmov 0   ;;  %vm128_vm1 = vcmask 261120   ;;  %s3290_s30 = smov 96   ;;  %s4082_s29 = smov 104   ;;  %vm248_vm2 = vcmask 64512   ;;  %s4038_s4 = inlined_call_operand.vmem [shape: bf16[32,64], index: 4, kind: input, shape index: {}]   ;;  %s4039_s0 = inlined_call_operand.vmem [shape: f32[16,32], index: 0, kind: input, shape index: {}]   ;;  %s4040_s2 = inlined_call_operand.vmem [shape: f32[16,32], index: 2, kind: input, shape index: {}]   ;;  %s4041_s5 = inlined_call_operand.vmem [shape: f32[1,64], index: 5, kind: input, shape index: {}]   ;;  %s4042_s6 = inlined_call_operand.vmem [shape: bf16[32,32], index: 6, kind: input, shape index: {}]   ;;  %s4043_s7 = inlined_call_operand.vmem [shape: f32[1,32], index: 7, kind: input, shape index: {}]   ;;  %s4044_s8 = inlined_call_operand.vmem [shape: bf16[32,32], index: 8, kind: input, shape index: {}]   ;;  %s4045_s9 = inlined_call_operand.vmem [shape: f32[1,32], index: 9, kind: input, shape index: {}]   ;;  %s4046_s12 = inlined_call_operand.vmem [shape: bf16[32,32], index: 12, kind: input, shape index: {}]   ;;  %s4047_s1 = inlined_call_operand.vmem [shape: f32[32,32], index: 1, kind: input, shape index: {}]   ;;  %s4048_s3 = inlined_call_operand.vmem [shape: f32[32,32], index: 3, kind: input, shape index: {}]   ;;  %s4049_s10 = inlined_call_operand.vmem [shape: bf16[32,32], index: 10, kind: input, shape index: {}]   ;;  %s4050_s22 = inlined_call_operand.vmem [shape: f32[1,32], index: 22, kind: input, shape index: {}]   ;;  %s4051_s23 = inlined_call_operand.vmem [shape: f32[1,32], index: 23, kind: input, shape index: {}]   ;;  %s4052_s13 = inlined_call_operand.vmem [shape: f32[1,32], index: 13, kind: input, shape index: {}]   ;;  %s4053_s11 = inlined_call_operand.vmem [shape: f32[1,32], index: 11, kind: input, shape index: {}]   ;;  %s4054_s14 = inlined_call_operand.vmem [shape: bf16[32,32], index: 14, kind: input, shape index: {}]   ;;  %s4055_s15 = inlined_call_operand.vmem [shape: f32[1,32], index: 15, kind: input, shape index: {}]   ;;  %s4056_s16 = inlined_call_operand.vmem [shape: bf16[32,32], index: 16, kind: input, shape index: {}]   ;;  %s4057_s17 = inlined_call_operand.vmem [shape: f32[1,32], index: 17, kind: input, shape index: {}]   ;;  %s4058_s18 = inlined_call_operand.vmem [shape: bf16[32,64], index: 18, kind: input, shape index: {}]   ;;  %s4059_s20 = inlined_call_operand.vmem [shape: bf16[64,32], index: 20, kind: input, shape index: {}]   ;;  %s4060_s24 = inlined_call_operand.vmem [shape: f32[1,32], index: 24, kind: input, shape index: {}]   ;;  %s4061_s25 = inlined_call_operand.vmem [shape: f32[1,32], index: 25, kind: input, shape index: {}]   ;;  %s4062_s19 = inlined_call_operand.vmem [shape: f32[1,64], index: 19, kind: input, shape index: {}]   ;;  %s4063_s21 = inlined_call_operand.vmem [shape: f32[1,32], index: 21, kind: input, shape index: {}]   ;;  %s4064_s26 = inlined_call_operand.vmem [shape: f32[1,32], index: 26, kind: input, shape index: {}]   ;;  %s4065_s27 = inlined_call_operand.vmem [shape: f32[1,32], index: 27, kind: input, shape index: {}]   ;;  %s4066_s28 = inlined_call_operand.vmem [shape: f32[16,32], index: 28, kind: output, shape index: {}]  }
   0x1   :  { %4084 = sst [smem:[#allocation3_spill]] %s4038_s4  ;;  %2912 = vmatprep.subr.bf16.mxu1 %v3288_v0  ;;  %2916 = vmatprep.mubr.msk.bf16.mxu1 %vm3289_vm0, %v3288_v0  ;;  %vm311_vm3 = vcmask 1043456   ;;  %vm472_vm4 = vcmask 130112   ;;  %vm588_vm5 = vcmask 195712   ;;  %vm704_vm6 = vcmask 261312  }
   0x2   :  { %4085 = sst [smem:[#allocation4_spill]] %s4039_s0  ;;  %2928 = vmatprep.subr.bf16.mxu0 %v3288_v0  ;;  %2930 = vmatprep.mubr.msk.bf16.mxu0 %vm3289_vm0, %v3288_v0  ;;  %vm1567_vm7 = vcmask 130048   ;;  %vm2642_vm8 = vcmask 523264  }
   0x3   :  { %4086 = sst [smem:[#allocation5_spill]] %s4040_s2  ;;  %s4098_s0 = sld [smem:[#allocation4_spill]] }
   0x4   :  { %4087 = sst [smem:[#allocation6_spill]] %s4041_s5  ;;  %s3292_s5 = smov 88  }
   0x5   :  { %4088 = sst [smem:[#allocation7_spill]] %s4042_s6 }
   0x6   :  { %4089 = sst [smem:[#allocation8_spill]] %s4043_s7  ;;  %s4097_s7 = sld [smem:[#allocation3_spill]] }
   0x7   :  { %4090 = sst [smem:[#allocation9_spill]] %s4044_s8  ;;  %s3293_s8 = smov 80  }
   0x8   :  { %4091 = sst [smem:[#allocation10_spill]] %s4045_s9  ;;  %s4103_s9 = sld [smem:[#allocation9_spill]] }
   0x9   :  { %4092 = sst [smem:[#allocation11_spill]] %s4046_s12  ;;  %v3460_v3 = vld [vmem:[%s4098_s0] sm:$0xff]  ;;  %v3465_v4 = vld [vmem:[%s4098_s0 + $0x8] sm:$0xff]  ;;  %s3294_s0 = smov 112  }
   0xa   :  { %4093 = sst [smem:[#allocation12_spill]] %s4047_s1  ;;  %v175_v25 = vpack.c.bf16 %v3465_v4, %v3460_v3  ;;  %s4104_s12 = sld [smem:[#allocation10_spill]] }
   0xb   :  { %4094 = sst [smem:[#allocation13_spill]] %s4048_s3  ;;  %s3291_s3 = smov 120  }
   0xc   :  { %4095 = sst [smem:[#allocation14_spill]] %s4049_s10  ;;  %v3192_v1 = vld [vmem:[%s4097_s7] sm:$0xff]   ;;  %v3193_v2 = vld [vmem:[%s4097_s7 + $0x8] sm:$0xff]   ;;  %s3295_s10 = smov 72  }
   0xd   :  { %4096 = sst [smem:[#allocation15_spill]] %s4050_s22  ;;  %2913 = vmatpush3.bf16.msra.mxu1 %v3192_v1  ;;  %s4099_s22 = sld [smem:[#allocation5_spill]] }
   0xe   :  { %2914 = vmatprep.subr.bf16.mxu1 %v3288_v0  ;;  %s4100_s7 = sld [smem:[#allocation6_spill]]  ;;  %s4105_s2 = sld [smem:[#allocation11_spill]] }
   0xf   :  { %s4106_s1 = sld [smem:[#allocation12_spill]] }
  0x11   :  { %2915 = vmatpush3.bf16.msra.mxu1 %v3193_v2 }
  0x12   :  { %2920 = vmatprep.subr.bf16.mxu1 %v3288_v0 }
  0x13   :  { %v3470_v5 = vld [vmem:[%s4099_s22] sm:$0xff]  ;;  %v3476_v6 = vld [vmem:[%s4099_s22 + $0x8] sm:$0xff]  ;;  %s4101_s22 = sld [smem:[#allocation7_spill]] }
  0x14   :  { %v102_v7 = vadd.f32 %v3470_v5, %v3460_v3  ;;  %v103_v8 = vadd.f32 %v3476_v6, %v3465_v4  ;;  %v2739_v10 = vld [vmem:[%s4100_s7] ss:$0 sm:$0xff]  ;;  %s4102_s7 = sld [smem:[#allocation8_spill]] }
  0x16   :  { %v104_v9 = vpack.c.bf16 %v103_v8, %v102_v7 }
  0x18   :  { %2917 = vmatmul.mubr.msk.bf16.vlgmr.msra.gmra.mrb[0].mxu1 %vm128_vm1, %v104_v9 }
  0x19   :  { %2924 = vmatprep.mubr.msk.bf16.mxu1 %vm3289_vm0, %v3288_v0  ;;  %v3194_v23 = vld [vmem:[%s4101_s22] sm:$0xff]   ;;  %v3195_v24 = vld [vmem:[%s4101_s22 + $0x8] sm:$0xff]  }
  0x1a   :  { %2921 = vmatpush3.bf16.msra.mxu1 %v3194_v23 }
  0x1b   :  { %2922 = vmatprep.subr.bf16.mxu1 %v3288_v0 }
  0x1e   :  { %2923 = vmatpush3.bf16.msra.mxu1 %v3195_v24 }
  0x1f   :  { %2934 = vmatprep.subr.bf16.mxu1 %v3288_v0 }
  0x21   :  { %2925 = vmatmul.mubr.msk.bf16.vlgmr.msra.gmra.mrb[4].mxu1 %vm128_vm1, %v175_v25 }
  0x22   :  { %2936 = vmatprep.mubr.msk.bf16.mxu1 %vm3289_vm0, %v3288_v0 }
  0xeb   :  { %v166_v11 = vpop.f32.mrb[0].mxu1 }
  0xec   :  { %v167_v12 = vadd.f32 %v2739_v10, %v166_v11  ;;  %v2918_v13 = vpop.f32.mrb[1].mxu1 }
  0xed   :  { %v169_v14 = vpop.f32.mrb[2].mxu1 }
  0xee   :  { %v173_v15 = vmul.f32 0.35355338, %v167_v12  ;;  %v244_v16 = vpack.c.bf16 %v167_v12, %v167_v12  ;;  %v2919_v17 = vpop.f32.mrb[3].mxu1  ;;  %v170_v19 = vadd.f32 %v2739_v10, %v169_v14 }
  0xf0   :  { %v243_v18 = vpack.c.bf16 %v173_v15, %v173_v15  ;;  %246 = vrot.lane.b32.xlu0 %v244_v16, %s3290_s30  ;;  %v174_v20 = vmul.f32 0.35355338, %v170_v19  ;;  %v707_v21 = vpack.c.bf16 %v170_v19, %v170_v19 }
  0xf2   :  { %357 = vrot.lane.b32.xlu1 %v243_v18, %s3291_s3  ;;  %v706_v22 = vpack.c.bf16 %v174_v20, %v174_v20 }
  0xf4   :  { %359 = vrot.lane.b32.xlu0 %v244_v16, %s3292_s5 }
  0xf6   :  { %476 = vrot.lane.b32.xlu1 %v244_v16, %s3293_s8 }
  0xf8   :  { %474 = vrot.lane.b32.xlu0 %v243_v18, %s3294_s0 }
  0xfa   :  { %592 = vrot.lane.b32.xlu1 %v244_v16, %s3295_s10 }
  0xfc   :  { %590 = vrot.lane.b32.xlu0 %v243_v18, %s4082_s29 }
  0xfe   :  { %709 = vrot.lane.b32.xlu1 %v707_v21, %s3290_s30  ;;  %s4080_s30 = smov 8  }
 0x100   :  { %820 = vrot.lane.b32.xlu0 %v707_v21, %s3292_s5  ;;  %s4078_s5 = smov 16  }
 0x102   :  { %818 = vrot.lane.b32.xlu1 %v706_v22, %s3291_s3 }
 0x104   :  { %936 = vrot.lane.b32.xlu0 %v707_v21, %s3293_s8  ;;  %s4076_s8 = smov 24  }
 0x106   :  { %934 = vrot.lane.b32.xlu1 %v706_v22, %s3294_s0 }
 0x108   :  { %1051 = vrot.lane.b32.xlu0 %v707_v21, %s3295_s10 }
 0x10a   :  { %1049 = vrot.lane.b32.xlu1 %v706_v22, %s4082_s29 }
 0x162   :  { %v247_v26 = vpop.permute.xlu0 %246 }
 0x163   :  { %v253_v27 = vsel %vm248_vm2, %v247_v26, 0 }
 0x164   :  { %2929 = vmatpush3.bf16.xpose.msra.mxu0 %v253_v27  ;;  %v358_v29 = vpop.permute.xlu1 %357  ;;  %v236_v27 = vpop.f32.mrb[4].mxu1 }
 0x165   :  { %2940 = vmatprep.subr.bf16.mxu0 %v3288_v0 }
 0x166   :  { %v360_v28 = vpop.permute.xlu0 %359 }
 0x167   :  { %v365_v30 = vsel %vm248_vm2, %v360_v28, 0 }
 0x168   :  { %v477_v31 = vpop.permute.xlu1 %476 }
 0x169   :  { %v482_v32 = vsel %vm248_vm2, %v477_v31, 0 }
 0x16a   :  { %v475_v34 = vpop.permute.xlu0 %474 }
 0x16b   :  { %2931 = vmatmul.mubr.msk.bf16.vlgmr.msra.gmra.mrb[0].mxu0 %vm248_vm2, %v243_v18 }
 0x16c   :  { %2941 = vmatpush3.bf16.xpose.msra.mxu0 %v365_v30  ;;  %2942 = vmatprep.mubr.msk.bf16.mxu0 %vm3289_vm0, %v3288_v0  ;;  %v593_v33 = vpop.permute.xlu1 %592 }
 0x16d   :  { %2952 = vmatprep.subr.bf16.mxu0 %v3288_v0  ;;  %v598_v35 = vsel %vm248_vm2, %v593_v33, 0 }
 0x16e   :  { %v591_v37 = vpop.permute.xlu0 %590 }
 0x170   :  { %v710_v36 = vpop.permute.xlu1 %709 }
 0x171   :  { %v715_v38 = vsel %vm248_vm2, %v710_v36, 0 }
 0x172   :  { %v821_v39 = vpop.permute.xlu0 %820 }
 0x173   :  { %2943 = vmatmul.mubr.msk.bf16.vlgmr.msra.gmra.mrb[4].mxu0 %vm248_vm2, %v358_v29  ;;  %v826_v40 = vsel %vm248_vm2, %v821_v39, 0  ;;  %v2926_v29 = vpop.f32.mrb[5].mxu1 }
 0x174   :  { %2953 = vmatpush3.bf16.xpose.msra.mxu0 %v482_v32  ;;  %2954 = vmatprep.mubr.msk.bf16.mxu0 %vm3289_vm0, %v3288_v0  ;;  %v819_v42 = vpop.permute.xlu1 %818  ;;  %v239_v31 = vpop.f32.mrb[6].mxu1  ;;  %v2743_v32 = vld [vmem:[%s4102_s7] ss:$0 sm:$0xff]  ;;  %s4107_s7 = sld [smem:[#allocation13_spill]] }
 0x175   :  { %2964 = vmatprep.subr.bf16.mxu0 %v3288_v0  ;;  %v2927_v33 = vpop.f32.mrb[7].mxu1 }
 0x176   :  { %v937_v41 = vpop.permute.xlu0 %936 }
 0x177   :  { %v942_v43 = vsel %vm248_vm2, %v937_v41, 0 }
 0x178   :  { %v935_v45 = vpop.permute.xlu1 %934 }
 0x17a   :  { %v1052_v44 = vpop.permute.xlu0 %1051 }
 0x17b   :  { %2955 = vmatmul.mubr.msk.bf16.vlgmr.msra.gmra.mrb[8].mxu0 %vm248_vm2, %v475_v34  ;;  %v1057_v46 = vsel %vm248_vm2, %v1052_v44, 0  ;;  %v237_v34 = vadd.f32 %v2743_v32, %v236_v27 }
 0x17c   :  { %2965 = vmatpush3.bf16.xpose.msra.mxu0 %v598_v35  ;;  %2966 = vmatprep.mubr.msk.bf16.mxu0 %vm3289_vm0, %v3288_v0  ;;  %v1050_v47 = vpop.permute.xlu1 %1049  ;;  %v3577_v35 = vadd.f32 %v2743_v32, %v239_v31 }
 0x17d   :  { %2976 = vmatprep.subr.bf16.mxu0 %v3288_v0  ;;  %v307_v36 = vpack.c.bf16 %v237_v34, %v237_v34 }
 0x183   :  { %2967 = vmatmul.mubr.msk.bf16.vlgmr.msra.gmra.mrb[12].mxu0 %vm248_vm2, %v591_v37  ;;  %v313_v37 = vsel %vm311_vm3, %v307_v36, 0 }
 0x184   :  { %2977 = vmatpush3.bf16.xpose.msra.mxu0 %v715_v38  ;;  %2978 = vmatprep.mubr.msk.bf16.mxu0 %vm3289_vm0, %v3288_v0 }
 0x185   :  { %2988 = vmatprep.subr.bf16.mxu0 %v3288_v0  ;;  %2935 = vmatpush3.bf16.msra.mxu1 %v313_v37 }
 0x186   :  { %2946 = vmatprep.subr.bf16.mxu1 %v3288_v0 }
 0x18b   :  { %2979 = vmatmul.mubr.msk.bf16.vlgmr.msra.gmra.mrb[16].mxu0 %vm248_vm2, %v706_v22 }
 0x18c   :  { %2989 = vmatpush3.bf16.xpose.msra.mxu0 %v826_v40  ;;  %2990 = vmatprep.mubr.msk.bf16.mxu0 %vm3289_vm0, %v3288_v0 }
 0x18d   :  { %3000 = vmatprep.subr.bf16.mxu0 %v3288_v0 }
 0x193   :  { %2991 = vmatmul.mubr.msk.bf16.vlgmr.msra.gmra.mrb[20].mxu0 %vm248_vm2, %v819_v42 }
 0x194   :  { %3001 = vmatpush3.bf16.xpose.msra.mxu0 %v942_v43  ;;  %3002 = vmatprep.mubr.msk.bf16.mxu0 %vm3289_vm0, %v3288_v0 }
 0x195   :  { %3012 = vmatprep.subr.bf16.mxu0 %v3288_v0 }
 0x19b   :  { %3003 = vmatmul.mubr.msk.bf16.vlgmr.msra.gmra.mrb[24].mxu0 %vm248_vm2, %v935_v45 }
 0x19c   :  { %3013 = vmatpush3.bf16.xpose.msra.mxu0 %v1057_v46  ;;  %3014 = vmatprep.mubr.msk.bf16.mxu0 %vm3289_vm0, %v3288_v0 }
 0x19d   :  { %3024 = vmatprep.subr.bf16.mxu0 %v3288_v0 }
 0x1a3   :  { %3015 = vmatmul.mubr.msk.bf16.vlgmr.msra.gmra.mrb[28].mxu0 %vm248_vm2, %v1050_v47 }
 0x1a4   :  { %3028 = vmatprep.mubr.msk.bf16.mxu0 %vm3289_vm0, %v3288_v0 }
 0x23e   :  { %v3548_v48 = vpop.f32.mrb[0].mxu0 }
 0x23f   :  { %v2932_v49 = vpop.f32.mrb[1].mxu0  ;;  %v295_v50 = vsel %vm248_vm2, %v3548_v48, -inf }
 0x240   :  { %v292_v51 = vpop.f32.mrb[2].mxu0  ;;  %296 = vmax.xlane.f32.xlu0 %v295_v50 }
 0x241   :  { %v2933_v52 = vpop.f32.mrb[3].mxu0 }
 0x246   :  { %v401_v53 = vpop.f32.mrb[4].mxu0 }
 0x247   :  { %v2944_v54 = vpop.f32.mrb[5].mxu0  ;;  %v407_v55 = vsel %vm248_vm2, %v401_v53, -inf }
 0x248   :  { %v404_v56 = vpop.f32.mrb[6].mxu0  ;;  %408 = vmax.xlane.f32.xlu1 %v407_v55 }
 0x249   :  { %v2945_v57 = vpop.f32.mrb[7].mxu0 }
 0x24e   :  { %v518_v58 = vpop.f32.mrb[8].mxu0 }
 0x24f   :  { %v2956_v59 = vpop.f32.mrb[9].mxu0  ;;  %v524_v60 = vsel %vm248_vm2, %v518_v58, -inf }
 0x250   :  { %v521_v61 = vpop.f32.mrb[10].mxu0  ;;  %525 = vmax.xlane.f32.xlu0 %v524_v60 }
 0x251   :  { %v2957_v62 = vpop.f32.mrb[11].mxu0 }
 0x256   :  { %v3554_v63 = vpop.f32.mrb[12].mxu0 }
 0x257   :  { %v2968_v1 = vpop.f32.mrb[13].mxu0  ;;  %v640_v2 = vsel %vm248_vm2, %v3554_v63, -inf }
 0x258   :  { %v637_v7 = vpop.f32.mrb[14].mxu0  ;;  %641 = vmax.xlane.f32.xlu0 %v640_v2 }
 0x259   :  { %v2969_v8 = vpop.f32.mrb[15].mxu0 }
 0x25e   :  { %v3558_v9 = vpop.f32.mrb[16].mxu0 }
 0x25f   :  { %v2980_v10 = vpop.f32.mrb[17].mxu0  ;;  %v757_v11 = vsel %vm248_vm2, %v3558_v9, -inf }
 0x260   :  { %758 = vmax.xlane.f32.xlu1 %v757_v11  ;;  %v754_v12 = vpop.f32.mrb[18].mxu0 }
 0x261   :  { %v2981_v13 = vpop.f32.mrb[19].mxu0 }
 0x266   :  { %v3562_v14 = vpop.f32.mrb[20].mxu0 }
 0x267   :  { %v2992_v15 = vpop.f32.mrb[21].mxu0  ;;  %v868_v16 = vsel %vm248_vm2, %v3562_v14, -inf }
 0x268   :  { %869 = vmax.xlane.f32.xlu0 %v868_v16  ;;  %v865_v17 = vpop.f32.mrb[22].mxu0 }
 0x269   :  { %v2993_v18 = vpop.f32.mrb[23].mxu0 }
 0x26e   :  { %v3566_v19 = vpop.f32.mrb[24].mxu0 }
 0x26f   :  { %v3004_v20 = vpop.f32.mrb[25].mxu0  ;;  %v984_v21 = vsel %vm248_vm2, %v3566_v19, -inf }
 0x270   :  { %985 = vmax.xlane.f32.xlu1 %v984_v21  ;;  %v981_v22 = vpop.f32.mrb[26].mxu0 }
 0x271   :  { %v3005_v23 = vpop.f32.mrb[27].mxu0 }
 0x276   :  { %v3570_v24 = vpop.f32.mrb[28].mxu0 }
 0x277   :  { %v3016_v25 = vpop.f32.mrb[29].mxu0  ;;  %v1099_v26 = vsel %vm248_vm2, %v3570_v24, -inf }
 0x278   :  { %1100 = vmax.xlane.f32.xlu0 %v1099_v26  ;;  %v1096_v28 = vpop.f32.mrb[30].mxu0 }
 0x279   :  { %v3017_v30 = vpop.f32.mrb[31].mxu0 }
 0x2cd   :  { %v297_v38 = vpop.xlane.xlu0 %296 }
 0x2ce   :  { %v298_v39 = vsub.f32 %v3548_v48, %v297_v38 }
 0x2d0   :  { %v299_v40 = vmul.f32 1.442695, %v298_v39 }
 0x2d2   :  { %3212 = vpow2.f32 %v299_v40 }
 0x2d5   :  { %v409_v41 = vpop.xlane.xlu1 %408 }
 0x2d6   :  { %v410_v42 = vsub.f32 %v401_v53, %v409_v41 }
 0x2d8   :  { %v411_v43 = vmul.f32 1.442695, %v410_v42 }
 0x2da   :  { %3214 = vpow2.f32 %v411_v43 }
 0x2dc   :  { %v3213_v44 = vpop.eup %3212 }
 0x2dd   :  { %v526_v45 = vpop.xlane.xlu0 %525  ;;  %v301_v46 = vsel %vm248_vm2, %v3213_v44, 0.0 }
 0x2de   :  { %v527_v47 = vsub.f32 %v518_v58, %v526_v45  ;;  %302 = vadd.xlane.f32.xlu1 %v301_v46 }
 0x2e0   :  { %v528_v49 = vmul.f32 1.442695, %v527_v47 }
 0x2e2   :  { %3216 = vpow2.f32 %v528_v49 }
 0x2e4   :  { %v3215_v50 = vpop.eup %3214 }
 0x2e5   :  { %v642_v51 = vpop.xlane.xlu0 %641  ;;  %v413_v52 = vsel %vm248_vm2, %v3215_v50, 0.0 }
 0x2e6   :  { %v643_v48 = vsub.f32 %v3554_v63, %v642_v51  ;;  %414 = vadd.xlane.f32.xlu0 %v413_v52 }
 0x2e8   :  { %v644_v54 = vmul.f32 1.442695, %v643_v48 }
 0x2ea   :  { %3218 = vpow2.f32 %v644_v54 }
 0x2ec   :  { %v3585_v53 = vpop.eup %3216 }
 0x2ed   :  { %v530_v55 = vsel %vm248_vm2, %v3585_v53, 0.0  ;;  %v759_v58 = vpop.xlane.xlu1 %758 }
 0x2ee   :  { %531 = vadd.xlane.f32.xlu1 %v530_v55  ;;  %v760_v59 = vsub.f32 %v3558_v9, %v759_v58 }
 0x2f0   :  { %v761_v63 = vmul.f32 1.442695, %v760_v59 }
 0x2f2   :  { %3220 = vpow2.f32 %v761_v63 }
 0x2f4   :  { %v3589_v56 = vpop.eup %3218 }
 0x2f5   :  { %v646_v57 = vsel %vm248_vm2, %v3589_v56, 0.0  ;;  %v870_v60 = vpop.xlane.xlu0 %869 }
 0x2f6   :  { %647 = vadd.xlane.f32.xlu0 %v646_v57  ;;  %v871_v62 = vsub.f32 %v3562_v14, %v870_v60 }
 0x2f8   :  { %v872_v7 = vmul.f32 1.442695, %v871_v62 }
 0x2fa   :  { %3222 = vpow2.f32 %v872_v7 }
 0x2fc   :  { %v3600_v12 = vpop.eup %3220 }
 0x2fd   :  { %v986_v61 = vpop.xlane.xlu1 %985  ;;  %v763_v13 = vsel %vm248_vm2, %v3600_v12, 0.0 }
 0x2fe   :  { %v987_v1 = vsub.f32 %v3566_v19, %v986_v61  ;;  %v769_v19 = vpack.c.bf16 %v3577_v35, %v3577_v35 }
 0x2ff   :  { %536 = vrot.lane.b32.xlu1 %v307_v36, %s3294_s0 }
 0x300   :  { %v988_v8 = vmul.f32 1.442695, %v987_v1  ;;  %v774_v42 = vsel %vm311_vm3, %v769_v19, 0 }
 0x302   :  { %3224 = vpow2.f32 %v988_v8 }
 0x303   :  { %652 = vrot.lane.b32.xlu1 %v307_v36, %s4082_s29 }
 0x304   :  { %v3602_v9 = vpop.eup %3222 }
 0x305   :  { %v1101_v2 = vpop.xlane.xlu0 %1100  ;;  %v874_v15 = vsel %vm248_vm2, %v3602_v9, 0.0 }
 0x306   :  { %v1102_v10 = vsub.f32 %v3570_v24, %v1101_v2 }
 0x308   :  { %v1103_v11 = vmul.f32 1.442695, %v1102_v10 }
 0x30a   :  { %3226 = vpow2.f32 %v1103_v11 }
 0x30c   :  { %420 = vrot.lane.b32.xlu0 %v307_v36, %s3291_s3  ;;  %v3606_v14 = vpop.eup %3224 }
 0x30d   :  { %v990_v16 = vsel %vm248_vm2, %v3606_v14, 0.0 }
 0x314   :  { %v3612_v17 = vpop.eup %3226 }
 0x315   :  { %v1105_v18 = vsel %vm248_vm2, %v3612_v17, 0.0 }
 0x327   :  { %764 = vadd.xlane.f32.xlu1 %v763_v13 }
 0x32b   :  { %875 = vadd.xlane.f32.xlu1 %v874_v15  ;;  %991 = vadd.xlane.f32.xlu0 %v990_v16 }
 0x32f   :  { %1106 = vadd.xlane.f32.xlu1 %v1105_v18 }
 0x340   :  { %996 = vrot.lane.b32.xlu1 %v769_v19, %s3294_s0 }
 0x341   :  { %881 = vrot.lane.b32.xlu0 %v769_v19, %s3291_s3 }
 0x345   :  { %1111 = vrot.lane.b32.xlu0 %v769_v19, %s4082_s29 }
 0x36b   :  { %v303_v20 = vpop.xlane.xlu1 %302 }
 0x36c   :  { %3228 = vrcp.f32 %v303_v20 }
 0x373   :  { %v415_v22 = vpop.xlane.xlu0 %414 }
 0x374   :  { %3230 = vrcp.f32 %v415_v22 }
 0x376   :  { %v3229_v21 = vpop.eup %3228 }
 0x377   :  { %v305_v23 = vmul.f32 %v3229_v21, %v3213_v44 }
 0x379   :  { %v306_v24 = vpack.c.bf16 %v305_v23, %v305_v23 }
 0x37b   :  { %2937 = vmatmul.mubr.msk.bf16.vlgmr.msra.gmra.mrb[8].mxu1 %vm248_vm2, %v306_v24  ;;  %v532_v25 = vpop.xlane.xlu1 %531 }
 0x37c   :  { %2948 = vmatprep.mubr.msk.bf16.mxu1 %vm3289_vm0, %v3288_v0  ;;  %3232 = vrcp.f32 %v532_v25 }
 0x37e   :  { %v3231_v26 = vpop.eup %3230 }
 0x37f   :  { %v417_v28 = vmul.f32 %v3231_v26, %v3215_v50  ;;  %v537_v31 = vpop.permute.xlu1 %536 }
 0x380   :  { %v542_v34 = vsel %vm311_vm3, %v537_v31, 0  ;;  %v3197_v31 = vld [vmem:[%s4103_s9 + $0x8] sm:$0xff]  }
 0x381   :  { %v418_v32 = vpack.c.bf16 %v417_v28, %v417_v28 }
 0x383   :  { %v648_v27 = vpop.xlane.xlu0 %647  ;;  %v653_v36 = vpop.permute.xlu1 %652 }
 0x384   :  { %3234 = vrcp.f32 %v648_v27  ;;  %v658_v39 = vsel %vm311_vm3, %v653_v36, 0 }
 0x386   :  { %v3233_v33 = vpop.eup %3232 }
 0x387   :  { %v421_v29 = vpop.permute.xlu0 %420  ;;  %v534_v35 = vmul.f32 %v3233_v33, %v3585_v53 }
 0x388   :  { %v426_v30 = vsel %vm311_vm3, %v421_v29, 0 }
 0x389   :  { %2947 = vmatpush3.bf16.msra.mxu1 %v426_v30  ;;  %v535_v37 = vpack.c.bf16 %v534_v35, %v534_v35  ;;  %v3196_v30 = vld [vmem:[%s4103_s9] sm:$0xff]  }
 0x38a   :  { %2958 = vmatprep.subr.bf16.mxu1 %v3288_v0  ;;  %3025 = vmatpush3.bf16.msra.mxu0 %v3196_v30 }
 0x38b   :  { %3026 = vmatprep.subr.bf16.mxu0 %v3288_v0 }
 0x38c   :  { %2949 = vmatmul.mubr.msk.bf16.vlgmr.msra.gmra.mrb[12].mxu1 %vm248_vm2, %v418_v32 }
 0x38d   :  { %2959 = vmatpush3.bf16.msra.mxu1 %v542_v34  ;;  %2960 = vmatprep.mubr.msk.bf16.mxu1 %vm3289_vm0, %v3288_v0 }
 0x38e   :  { %2970 = vmatprep.subr.bf16.mxu1 %v3288_v0  ;;  %v3235_v38 = vpop.eup %3234  ;;  %3027 = vmatpush3.bf16.msra.mxu0 %v3197_v31 }
 0x38f   :  { %v650_v40 = vmul.f32 %v3235_v38, %v3589_v56 }
 0x391   :  { %v651_v41 = vpack.c.bf16 %v650_v40, %v650_v40 }
 0x394   :  { %2961 = vmatmul.mubr.msk.bf16.vlgmr.msra.gmra.mrb[16].mxu1 %vm248_vm2, %v535_v37 }
 0x395   :  { %2971 = vmatpush3.bf16.msra.mxu1 %v658_v39  ;;  %2972 = vmatprep.mubr.msk.bf16.mxu1 %vm3289_vm0, %v3288_v0 }
 0x396   :  { %2982 = vmatprep.subr.bf16.mxu1 %v3288_v0 }
 0x39c   :  { %2973 = vmatmul.mubr.msk.bf16.vlgmr.msra.gmra.mrb[20].mxu1 %vm248_vm2, %v651_v41 }
 0x39d   :  { %2983 = vmatpush3.bf16.msra.mxu1 %v774_v42  ;;  %2984 = vmatprep.mubr.msk.bf16.mxu1 %vm3289_vm0, %v3288_v0 }
 0x39e   :  { %2994 = vmatprep.subr.bf16.mxu1 %v3288_v0 }
 0x3b4   :  { %v765_v43 = vpop.xlane.xlu1 %764 }
 0x3b5   :  { %3236 = vrcp.f32 %v765_v43 }
 0x3b8   :  { %v876_v44 = vpop.xlane.xlu1 %875  ;;  %v992_v45 = vpop.xlane.xlu0 %991 }
 0x3b9   :  { %3238 = vrcp.f32 %v876_v44 }
 0x3ba   :  { %3240 = vrcp.f32 %v992_v45 }
 0x3bc   :  { %v882_v49 = vpop.permute.xlu0 %881  ;;  %v1107_v52 = vpop.xlane.xlu1 %1106 }
 0x3bd   :  { %v887_v48 = vsel %vm311_vm3, %v882_v49, 0  ;;  %3242 = vrcp.f32 %v1107_v52 }
 0x3bf   :  { %v3237_v46 = vpop.eup %3236 }
 0x3c0   :  { %v767_v47 = vmul.f32 %v3237_v46, %v3600_v12  ;;  %v997_v53 = vpop.permute.xlu1 %996  ;;  %v1112_v59 = vpop.permute.xlu0 %1111 }
 0x3c1   :  { %v1002_v57 = vsel %vm311_vm3, %v997_v53, 0  ;;  %v1117_v62 = vsel %vm311_vm3, %v1112_v59, 0 }
 0x3c2   :  { %v768_v50 = vpack.c.bf16 %v767_v47, %v767_v47 }
 0x3c3   :  { %v3239_v51 = vpop.eup %3238 }
 0x3c4   :  { %2985 = vmatmul.mubr.msk.bf16.vlgmr.msra.gmra.mrb[24].mxu1 %vm248_vm2, %v768_v50  ;;  %v878_v54 = vmul.f32 %v3239_v51, %v3602_v9  ;;  %v3241_v56 = vpop.eup %3240  ;;  %v2766_v51 = vld [vmem:[%s4104_s12] ss:$0 sm:$0xff]  ;;  %s4108_s12 = sld [smem:[#allocation14_spill]] }
 0x3c5   :  { %2995 = vmatpush3.bf16.msra.mxu1 %v887_v48  ;;  %2996 = vmatprep.mubr.msk.bf16.mxu1 %vm3289_vm0, %v3288_v0  ;;  %v994_v58 = vmul.f32 %v3241_v56, %v3606_v14 }
 0x3c6   :  { %3006 = vmatprep.subr.bf16.mxu1 %v3288_v0  ;;  %v879_v55 = vpack.c.bf16 %v878_v54, %v878_v54 }
 0x3c7   :  { %v995_v60 = vpack.c.bf16 %v994_v58, %v994_v58  ;;  %v3243_v61 = vpop.eup %3242 }
 0x3c8   :  { %v1109_v63 = vmul.f32 %v3243_v61, %v3612_v17 }
 0x3ca   :  { %v1110_v1 = vpack.c.bf16 %v1109_v63, %v1109_v63 }
 0x3cc   :  { %2997 = vmatmul.mubr.msk.bf16.vlgmr.msra.gmra.mrb[28].mxu1 %vm248_vm2, %v879_v55 }
 0x3cd   :  { %3007 = vmatpush3.bf16.msra.mxu1 %v1002_v57  ;;  %3008 = vmatprep.mubr.msk.bf16.mxu1 %vm3289_vm0, %v3288_v0 }
 0x3ce   :  { %3018 = vmatprep.subr.bf16.mxu1 %v3288_v0 }
 0x3d4   :  { %3009 = vmatmul.mubr.msk.bf16.vlgmr.msra.gmra.mrb[32].mxu1 %vm248_vm2, %v995_v60 }
 0x3d5   :  { %3019 = vmatpush3.bf16.msra.mxu1 %v1117_v62  ;;  %3020 = vmatprep.mubr.msk.bf16.mxu1 %vm3289_vm0, %v3288_v0 }
 0x3d6   :  { %3032 = vmatprep.subr.bf16.mxu1 %v3288_v0 }
 0x3dc   :  { %3021 = vmatmul.mubr.msk.bf16.vlgmr.msra.gmra.mrb[36].mxu1 %vm248_vm2, %v1110_v1 }
 0x3dd   :  { %3036 = vmatprep.mubr.msk.bf16.mxu1 %vm3289_vm0, %v3288_v0 }
 0x44e   :  { %v349_v2 = vpop.f32.mrb[8].mxu1 }
 0x44f   :  { %355 = vst.msk [vmem:[#allocation2] sm:$0xff] %vm248_vm2, %v349_v2  ;;  %v2938_v7 = vpop.f32.mrb[9].mxu1 }
 0x450   :  { %v352_v8 = vpop.f32.mrb[10].mxu1 }
 0x451   :  { %v2939_v10 = vpop.f32.mrb[11].mxu1 }
 0x452   :  { %v3198_v10 = vld [vmem:[%s4105_s2] sm:$0xff]  }
 0x453   :  { %3040 = vmatprep.subr.bf16.mxu0 %v3198_v10 }
 0x45f   :  { %v462_v11 = vpop.f32.mrb[12].mxu1 }
 0x460   :  { %469 = vrot.lane.b32.xlu0 %v462_v11, %s4080_s30  ;;  %v2950_v12 = vpop.f32.mrb[13].mxu1  ;;  %v3199_v11 = vld [vmem:[%s4105_s2 + $0x8] sm:$0xff]  }
 0x461   :  { %v465_v9 = vpop.f32.mrb[14].mxu1  ;;  %v3705_v12 = vld [vmem:[%s4106_s1] sm:$0xff] }
 0x462   :  { %v2951_v13 = vpop.f32.mrb[15].mxu1  ;;  %v3710_v9 = vld [vmem:[%s4106_s1 + $0x8] sm:$0xff] }
 0x463   :  { %v98_v13 = vld [vmem:[%s4107_s7] sm:$0xff] }
 0x467   :  { %v578_v14 = vpop.f32.mrb[16].mxu1 }
 0x468   :  { %585 = vrot.lane.b32.xlu0 %v578_v14, %s4078_s5  ;;  %v2962_v15 = vpop.f32.mrb[17].mxu1  ;;  %v99_v14 = vld [vmem:[%s4107_s7 + $0x8] sm:$0xff] }
 0x469   :  { %v581_v16 = vpop.f32.mrb[18].mxu1  ;;  %v3721_v15 = vld [vmem:[%s4106_s1 + $0x10] sm:$0xff] }
 0x46a   :  { %v2963_v17 = vpop.f32.mrb[19].mxu1  ;;  %v1355_v16 = vadd.f32 %v98_v13, %v3705_v12 }
 0x46b   :  { %v1356_v17 = vadd.f32 %v99_v14, %v3710_v9 }
 0x46f   :  { %v694_v18 = vpop.f32.mrb[20].mxu1 }
 0x470   :  { %701 = vrot.lane.b32.xlu0 %v694_v18, %s4076_s8  ;;  %v2974_v19 = vpop.f32.mrb[21].mxu1  ;;  %v3728_v18 = vld [vmem:[%s4106_s1 + $0x18] sm:$0xff] }
 0x471   :  { %v697_v20 = vpop.f32.mrb[22].mxu1  ;;  %v100_v19 = vld [vmem:[%s4107_s7 + $0x10] sm:$0xff]  ;;  %v1440_v13 = vpack.c.bf16 %v3728_v18, %v3721_v15 }
 0x472   :  { %v2975_v21 = vpop.f32.mrb[23].mxu1  ;;  %v101_v20 = vld [vmem:[%s4107_s7 + $0x18] sm:$0xff] }
 0x473   :  { %v1357_v21 = vadd.f32 %v100_v19, %v3721_v15 }
 0x497   :  { %v810_v22 = vpop.f32.mrb[24].mxu1 }
 0x498   :  { %816 = vst.msk [vmem:[#allocation2 + $0x8] sm:$0xff] %vm248_vm2, %v810_v22  ;;  %v2986_v23 = vpop.f32.mrb[25].mxu1  ;;  %v1358_v22 = vadd.f32 %v101_v20, %v3728_v18 }
 0x499   :  { %v813_v24 = vpop.f32.mrb[26].mxu1  ;;  %v1359_v23 = vpack.c.bf16 %v1356_v17, %v1355_v16 }
 0x49a   :  { %v2987_v25 = vpop.f32.mrb[27].mxu1  ;;  %v1360_v24 = vpack.c.bf16 %v1358_v22, %v1357_v21 }
 0x49b   :  { %v3200_v25 = vld [vmem:[%s4108_s12] sm:$0xff]  }
 0x49c   :  { %3033 = vmatpush3.bf16.msra.mxu1 %v3200_v25 }
 0x49d   :  { %3034 = vmatprep.subr.bf16.mxu1 %v3288_v0 }
 0x49f   :  { %v923_v26 = vpop.f32.mrb[28].mxu1 }
 0x4a0   :  { %930 = vrot.lane.b32.xlu1 %v923_v26, %s4080_s30  ;;  %v2998_v27 = vpop.f32.mrb[29].mxu1  ;;  %v3201_v26 = vld [vmem:[%s4108_s12 + $0x8] sm:$0xff]  }
 0x4a1   :  { %v926_v28 = vpop.f32.mrb[30].mxu1  ;;  %3035 = vmatpush3.bf16.msra.mxu1 %v3201_v26 }
 0x4a2   :  { %v2999_v29 = vpop.f32.mrb[31].mxu1 }
 0x4a7   :  { %v1038_v32 = vpop.f32.mrb[32].mxu1 }
 0x4a8   :  { %1045 = vrot.lane.b32.xlu1 %v1038_v32, %s4078_s5  ;;  %v3010_v33 = vpop.f32.mrb[33].mxu1 }
 0x4a9   :  { %v1041_v34 = vpop.f32.mrb[34].mxu1 }
 0x4aa   :  { %v3011_v35 = vpop.f32.mrb[35].mxu1 }
 0x4af   :  { %v1153_v36 = vpop.f32.mrb[36].mxu1 }
 0x4b0   :  { %1160 = vrot.lane.b32.xlu1 %v1153_v36, %s4076_s8  ;;  %v3022_v37 = vpop.f32.mrb[37].mxu1  ;;  %s4109_s8 = sld [smem:[#allocation15_spill]] }
 0x4b1   :  { %v1156_v38 = vpop.f32.mrb[38].mxu1 }
 0x4b2   :  { %v3023_v39 = vpop.f32.mrb[39].mxu1  ;;  %v2768_v38 = vld [vmem:[%s4051_s23] ss:$0 sm:$0xff] }
 0x4b6   :  { %v2767_v34 = vld [vmem:[%s4109_s8] ss:$0 sm:$0xff] }
 0x4d2   :  { %v470_v40 = vpop.permute.xlu0 %469 }
 0x4d3   :  { %473 = vst.msk [vmem:[#allocation2] sm:$0xff] %vm472_vm4, %v470_v40 }
 0x4da   :  { %v586_v41 = vpop.permute.xlu0 %585 }
 0x4db   :  { %589 = vst.msk [vmem:[#allocation2] sm:$0xff] %vm588_vm5, %v586_v41 }
 0x4e2   :  { %v702_v42 = vpop.permute.xlu0 %701 }
 0x4e3   :  { %705 = vst.msk [vmem:[#allocation2] sm:$0xff] %vm704_vm6, %v702_v42 }
 0x4ea   :  { %v1164_v46 = vld [vmem:[#allocation2] sm:$0xff] }
 0x512   :  { %v931_v43 = vpop.permute.xlu1 %930 }
 0x513   :  { %933 = vst.msk [vmem:[#allocation2 + $0x8] sm:$0xff] %vm472_vm4, %v931_v43 }
 0x51a   :  { %v1046_v44 = vpop.permute.xlu1 %1045 }
 0x51b   :  { %1048 = vst.msk [vmem:[#allocation2 + $0x8] sm:$0xff] %vm588_vm5, %v1046_v44 }
 0x522   :  { %v1161_v45 = vpop.permute.xlu1 %1160 }
 0x523   :  { %1163 = vst.msk [vmem:[#allocation2 + $0x8] sm:$0xff] %vm704_vm6, %v1161_v45 }
 0x52a   :  { %v1165_v47 = vld [vmem:[#allocation2 + $0x8] sm:$0xff] }
 0x52b   :  { %v1166_v49 = vpack.c.bf16 %v1165_v47, %v1164_v46  ;;  %v2773_v46 = vld [vmem:[%s4052_s13] ss:$0 sm:$0xff] }
 0x52d   :  { %3029 = vmatmul.mubr.msk.bf16.vlgmr.msra.gmra.mrb[32].mxu0 %vm128_vm1, %v1166_v49 }
 0x52e   :  { %3041 = vmatpush3.bf16.msra.mxu0 %v3198_v10  ;;  %3044 = vmatprep.mubr.msk.bf16.mxu0 %vm128_vm1, %v1359_v23  ;;  %v3202_v10 = vld [vmem:[%s4054_s14] sm:$0xff]  }
 0x52f   :  { %3042 = vmatprep.subr.bf16.mxu0 %v3199_v11  ;;  %3048 = vmatprep.subr.bf16.mxu1 %v3202_v10 }
 0x532   :  { %3043 = vmatpush3.bf16.msra.mxu0 %v3199_v11  ;;  %v3203_v11 = vld [vmem:[%s4054_s14 + $0x8] sm:$0xff]  }
 0x533   :  { %3056 = vmatprep.subr.bf16.mxu0 %v3288_v0 }
 0x535   :  { %3045 = vmatmul.mubr.msk.bf16.vlgmr.msra.gmra.mrb[36].mxu0 %vm128_vm1, %v1360_v24 }
 0x536   :  { %3058 = vmatprep.mubr.msk.bf16.mxu0 %vm3289_vm0, %v3288_v0 }
 0x600   :  { %v1220_v50 = vpop.f32.mrb[32].mxu0 }
 0x601   :  { %v1227_v52 = vadd.f32 %v1220_v50, %v3460_v3  ;;  %v3030_v48 = vpop.f32.mrb[33].mxu0 }
 0x602   :  { %v1223_v54 = vpop.f32.mrb[34].mxu0 }
 0x603   :  { %v1228_v53 = vadd.f32 %v1223_v54, %v3465_v4  ;;  %v3031_v55 = vpop.f32.mrb[35].mxu0  ;;  %v1236_v56 = vadd.f32 %v2766_v51, %v1227_v52 }
 0x605   :  { %v1238_v57 = vsel %vm128_vm1, %v1236_v56, 0.0  ;;  %v1237_v58 = vadd.f32 %v2766_v51, %v1228_v53 }
 0x606   :  { %1239 = vadd.xlane.f32.xlu0 %v1238_v57 }
 0x607   :  { %v1241_v59 = vsel %vm128_vm1, %v1237_v58, 0.0 }
 0x608   :  { %1242 = vadd.xlane.f32.xlu1 %v1241_v59  ;;  %v3046_v47 = vpop.f32.mrb[36].mxu0 }
 0x609   :  { %v1433_v49 = vadd.f32 %v3046_v47, %v2773_v46  ;;  %v1424_v50 = vpop.f32.mrb[37].mxu0 }
 0x60a   :  { %v1425_v51 = vadd.f32 %v2773_v46, %v1424_v50  ;;  %v3047_v52 = vpop.f32.mrb[38].mxu0 }
 0x60b   :  { %v1436_v48 = vadd.f32 %v3047_v52, %v2773_v46  ;;  %v1427_v54 = vpop.f32.mrb[39].mxu0 }
 0x60c   :  { %v1428_v53 = vadd.f32 %v2773_v46, %v1427_v54 }
 0x60d   :  { %v3768_v55 = vpack.c.bf16 %v1436_v48, %v1433_v49 }
 0x60f   :  { %v1973_v19 = vsel %vm248_vm2, %v3768_v55, 0 }
 0x693   :  { %v1240_v60 = vpop.xlane.xlu0 %1239 }
 0x694   :  { %v1245_v61 = vmul.f32 0.03125, %v1240_v60 }
 0x695   :  { %v1243_v62 = vpop.xlane.xlu1 %1242 }
 0x696   :  { %v1247_v63 = vsub.f32 %v1236_v56, %v1245_v61  ;;  %v1246_v1 = vmul.f32 0.03125, %v1243_v62  ;;  %v2769_v56 = vld [vmem:[%s4053_s11] ss:$0 sm:$0xff]  ;;  %s4110_s11 = smov 104  }
 0x698   :  { %v1248_v2 = vsub.f32 %v1237_v58, %v1246_v1  ;;  %v1249_v3 = vmul.f32 %v1247_v63, %v1247_v63 }
 0x69a   :  { %v1251_v7 = vsel %vm128_vm1, %v1249_v3, 0.0  ;;  %v1250_v8 = vmul.f32 %v1248_v2, %v1248_v2 }
 0x69b   :  { %1252 = vadd.xlane.f32.xlu0 %v1251_v7 }
 0x69c   :  { %v1254_v4 = vsel %vm128_vm1, %v1250_v8, 0.0 }
 0x69f   :  { %1255 = vadd.xlane.f32.xlu0 %v1254_v4  ;;  %v1439_v4 = vpack.c.bf16 %v3710_v9, %v3705_v12 }
 0x728   :  { %v1253_v27 = vpop.xlane.xlu0 %1252 }
 0x729   :  { %v1257_v28 = vmul.f32 0.03125, %v1253_v27 }
 0x72b   :  { %v1259_v29 = vadd.f32 1e-05, %v1257_v28 }
 0x72c   :  { %v1256_v30 = vpop.xlane.xlu0 %1255 }
 0x72d   :  { %3244 = vrsqrt.f32 %v1259_v29  ;;  %v1258_v31 = vmul.f32 0.03125, %v1256_v30 }
 0x72f   :  { %v1260_v32 = vadd.f32 1e-05, %v1258_v31 }
 0x731   :  { %3246 = vrsqrt.f32 %v1260_v32 }
 0x737   :  { %v3245_v33 = vpop.eup %3244 }
 0x738   :  { %v1263_v35 = vmul.f32 %v3245_v33, %v1247_v63 }
 0x73a   :  { %v1272_v36 = vmul.f32 %v2767_v34, %v1263_v35 }
 0x73b   :  { %v3247_v37 = vpop.eup %3246 }
 0x73c   :  { %v1264_v39 = vmul.f32 %v3247_v37, %v1248_v2  ;;  %v3756_v41 = vadd.f32 %v2768_v38, %v1272_v36 }
 0x73e   :  { %v1273_v40 = vmul.f32 %v2767_v34, %v1264_v39  ;;  %v1283_v43 = vadd.f32 %v3756_v41, %v3470_v5  ;;  %v1520_v5 = vpack.c.bf16 %v1428_v53, %v1425_v51 }
 0x740   :  { %v3758_v42 = vadd.f32 %v2768_v38, %v1273_v40  ;;  %1629 = vrot.lane.b32.xlu1 %v1520_v5, %s3291_s3 }
 0x742   :  { %v1284_v44 = vadd.f32 %v3758_v42, %v3476_v6  ;;  %v1525_v6 = vsel %vm248_vm2, %v1520_v5, 0 }
 0x743   :  { %3057 = vmatpush3.bf16.xpose.msra.mxu0 %v1525_v6 }
 0x744   :  { %v1285_v45 = vpack.c.bf16 %v1284_v44, %v1283_v43  ;;  %3068 = vmatprep.subr.bf16.mxu0 %v3288_v0  ;;  %1743 = vrot.lane.b32.xlu1 %v1520_v5, %s3294_s0 }
 0x746   :  { %3037 = vmatmul.mubr.msk.bf16.vlgmr.msra.gmra.mrb[40].mxu1 %vm128_vm1, %v1285_v45 }
 0x747   :  { %3052 = vmatprep.mubr.msk.bf16.mxu1 %vm128_vm1, %v1439_v4  ;;  %3049 = vmatpush3.bf16.msra.mxu1 %v3202_v10 }
 0x748   :  { %3050 = vmatprep.subr.bf16.mxu1 %v3203_v11 }
 0x74b   :  { %3051 = vmatpush3.bf16.msra.mxu1 %v3203_v11 }
 0x74c   :  { %3062 = vmatprep.subr.bf16.mxu1 %v3288_v0 }
 0x74e   :  { %3053 = vmatmul.mubr.msk.bf16.vlgmr.msra.gmra.mrb[44].mxu1 %vm128_vm1, %v1440_v13 }
 0x74f   :  { %3064 = vmatprep.mubr.msk.bf16.mxu1 %vm3289_vm0, %v3288_v0 }
 0x7b2   :  { %v1630_v2 = vpop.permute.xlu1 %1629 }
 0x7b3   :  { %v1635_v3 = vsel %vm248_vm2, %v1630_v2, 0 }
 0x7b6   :  { %v1744_v12 = vpop.permute.xlu1 %1743 }
 0x7b7   :  { %v1749_v14 = vsel %vm248_vm2, %v1744_v12, 0 }
 0x819   :  { %v1346_v57 = vpop.f32.mrb[40].mxu1 }
 0x81a   :  { %v1347_v58 = vadd.f32 %v2769_v56, %v1346_v57  ;;  %v3038_v59 = vpop.f32.mrb[41].mxu1 }
 0x81b   :  { %v1349_v60 = vpop.f32.mrb[42].mxu1 }
 0x81c   :  { %v1353_v61 = vmul.f32 0.35355338, %v1347_v58  ;;  %v3039_v62 = vpop.f32.mrb[43].mxu1  ;;  %v1350_v1 = vadd.f32 %v2769_v56, %v1349_v60 }
 0x81e   :  { %v1519_v63 = vpack.c.bf16 %v1353_v61, %v1353_v61  ;;  %v1354_v7 = vmul.f32 0.35355338, %v1350_v1 }
 0x820   :  { %1741 = vrot.lane.b32.xlu1 %v1519_v63, %s3294_s0  ;;  %1626 = vrot.lane.b32.xlu0 %v1519_v63, %s3291_s3  ;;  %v1967_v8 = vpack.c.bf16 %v1354_v7, %v1354_v7 }
 0x821   :  { %3059 = vmatmul.mubr.msk.bf16.vlgmr.msra.gmra.mrb[40].mxu0 %vm248_vm2, %v1519_v63  ;;  %v3054_v4 = vpop.f32.mrb[44].mxu1 }
 0x822   :  { %3069 = vmatpush3.bf16.xpose.msra.mxu0 %v1635_v3  ;;  %3070 = vmatprep.mubr.msk.bf16.mxu0 %vm3289_vm0, %v3288_v0  ;;  %v1504_v11 = vpop.f32.mrb[45].mxu1 }
 0x823   :  { %3080 = vmatprep.subr.bf16.mxu0 %v3288_v0 }
 0x824   :  { %1854 = vrot.lane.b32.xlu1 %v1519_v63, %s4110_s11  ;;  %1856 = vrot.lane.b32.xlu0 %v1520_v5, %s4110_s11 }
 0x828   :  { %2076 = vrot.lane.b32.xlu0 %v3768_v55, %s3291_s3  ;;  %2073 = vrot.lane.b32.xlu1 %v1967_v8, %s3291_s3 }
 0x82c   :  { %2190 = vrot.lane.b32.xlu0 %v3768_v55, %s3294_s0  ;;  %2188 = vrot.lane.b32.xlu1 %v1967_v8, %s3294_s0 }
 0x830   :  { %2303 = vrot.lane.b32.xlu0 %v3768_v55, %s4110_s11  ;;  %2301 = vrot.lane.b32.xlu1 %v1967_v8, %s4110_s11 }
 0x892   :  { %v1627_v9 = vpop.permute.xlu0 %1626  ;;  %v1742_v16 = vpop.permute.xlu1 %1741 }
 0x893   :  { %3071 = vmatmul.mubr.msk.bf16.vlgmr.msra.gmra.mrb[44].mxu0 %vm248_vm2, %v1627_v9  ;;  %v3055_v9 = vpop.f32.mrb[46].mxu1 }
 0x894   :  { %3081 = vmatpush3.bf16.xpose.msra.mxu0 %v1749_v14  ;;  %3082 = vmatprep.mubr.msk.bf16.mxu0 %vm3289_vm0, %v3288_v0 }
 0x895   :  { %3092 = vmatprep.subr.bf16.mxu0 %v3288_v0 }
 0x896   :  { %v1857_v15 = vpop.permute.xlu0 %1856  ;;  %v1855_v18 = vpop.permute.xlu1 %1854 }
 0x897   :  { %v1862_v17 = vsel %vm248_vm2, %v1857_v15, 0  ;;  %v2778_v15 = vld [vmem:[%s4055_s15] ss:$0 sm:$0xff]  ;;  %s4111_s15 = smov 8  }
 0x89a   :  { %v2077_v20 = vpop.permute.xlu0 %2076  ;;  %v2074_v23 = vpop.permute.xlu1 %2073 }
 0x89b   :  { %3083 = vmatmul.mubr.msk.bf16.vlgmr.msra.gmra.mrb[48].mxu0 %vm248_vm2, %v1742_v16  ;;  %v2082_v21 = vsel %vm248_vm2, %v2077_v20, 0  ;;  %v1507_v16 = vpop.f32.mrb[47].mxu1  ;;  %v1516_v20 = vadd.f32 %v3055_v9, %v2778_v15 }
 0x89c   :  { %3093 = vmatpush3.bf16.xpose.msra.mxu0 %v1862_v17  ;;  %3094 = vmatprep.mubr.msk.bf16.mxu0 %vm3289_vm0, %v3288_v0 }
 0x89d   :  { %3104 = vmatprep.subr.bf16.mxu0 %v3288_v0 }
 0x89e   :  { %v2191_v22 = vpop.permute.xlu0 %2190  ;;  %v2189_v26 = vpop.permute.xlu1 %2188 }
 0x89f   :  { %v2196_v24 = vsel %vm248_vm2, %v2191_v22, 0 }
 0x8a2   :  { %v2304_v25 = vpop.permute.xlu0 %2303  ;;  %v2302_v28 = vpop.permute.xlu1 %2301 }
 0x8a3   :  { %3095 = vmatmul.mubr.msk.bf16.vlgmr.msra.gmra.mrb[52].mxu0 %vm248_vm2, %v1855_v18  ;;  %v2309_v27 = vsel %vm248_vm2, %v2304_v25, 0  ;;  %v1513_v18 = vadd.f32 %v3054_v4, %v2778_v15 }
 0x8a4   :  { %3105 = vmatpush3.bf16.xpose.msra.mxu0 %v1973_v19  ;;  %3106 = vmatprep.mubr.msk.bf16.mxu0 %vm3289_vm0, %v3288_v0  ;;  %v1505_v19 = vadd.f32 %v2778_v15, %v1504_v11 }
 0x8a5   :  { %3116 = vmatprep.subr.bf16.mxu0 %v3288_v0  ;;  %v3877_v22 = vpack.c.bf16 %v1516_v20, %v1513_v18 }
 0x8ab   :  { %3107 = vmatmul.mubr.msk.bf16.vlgmr.msra.gmra.mrb[56].mxu0 %vm248_vm2, %v1967_v8 }
 0x8ac   :  { %3117 = vmatpush3.bf16.xpose.msra.mxu0 %v2082_v21  ;;  %3118 = vmatprep.mubr.msk.bf16.mxu0 %vm3289_vm0, %v3288_v0  ;;  %v1508_v21 = vadd.f32 %v2778_v15, %v1507_v16 }
 0x8ad   :  { %3128 = vmatprep.subr.bf16.mxu0 %v3288_v0 }
 0x8b3   :  { %3119 = vmatmul.mubr.msk.bf16.vlgmr.msra.gmra.mrb[60].mxu0 %vm248_vm2, %v2074_v23  ;;  %v1580_v23 = vpack.c.bf16 %v1508_v21, %v1505_v19 }
 0x8b4   :  { %3129 = vmatpush3.bf16.xpose.msra.mxu0 %v2196_v24  ;;  %3130 = vmatprep.mubr.msk.bf16.mxu0 %vm3289_vm0, %v3288_v0 }
 0x8b5   :  { %3140 = vmatprep.subr.bf16.mxu0 %v3288_v0  ;;  %3063 = vmatpush3.bf16.msra.mxu1 %v1580_v23 }
 0x8b6   :  { %3074 = vmatprep.subr.bf16.mxu1 %v3288_v0 }
 0x8bb   :  { %3131 = vmatmul.mubr.msk.bf16.vlgmr.msra.gmra.mrb[64].mxu0 %vm248_vm2, %v2189_v26 }
 0x8bc   :  { %3141 = vmatpush3.bf16.xpose.msra.mxu0 %v2309_v27  ;;  %3142 = vmatprep.mubr.msk.bf16.mxu0 %vm3289_vm0, %v3288_v0 }
 0x8bd   :  { %3152 = vmatprep.subr.bf16.mxu0 %v3288_v0 }
 0x8c3   :  { %3143 = vmatmul.mubr.msk.bf16.vlgmr.msra.gmra.mrb[68].mxu0 %vm248_vm2, %v2302_v28 }
 0x8c4   :  { %3156 = vmatprep.mubr.msk.bf16.mxu0 %vm3289_vm0, %v3288_v0 }
 0x8f4   :  { %v1561_v29 = vpop.f32.mrb[40].mxu0 }
 0x8f5   :  { %v3060_v30 = vpop.f32.mrb[41].mxu0  ;;  %v1568_v31 = vsel %vm1567_vm7, %v1561_v29, -inf }
 0x8f6   :  { %1569 = vmax.xlane.f32.xlu0 %v1568_v31  ;;  %v1564_v32 = vpop.f32.mrb[42].mxu0 }
 0x8f7   :  { %v3061_v33 = vpop.f32.mrb[43].mxu0 }
 0x966   :  { %v3845_v34 = vpop.f32.mrb[44].mxu0 }
 0x967   :  { %v3072_v35 = vpop.f32.mrb[45].mxu0  ;;  %v1677_v36 = vsel %vm1567_vm7, %v3845_v34, -inf }
 0x968   :  { %v1674_v37 = vpop.f32.mrb[46].mxu0  ;;  %1678 = vmax.xlane.f32.xlu1 %v1677_v36 }
 0x969   :  { %v3073_v38 = vpop.f32.mrb[47].mxu0 }
 0x96e   :  { %v3849_v39 = vpop.f32.mrb[48].mxu0 }
 0x96f   :  { %v3084_v40 = vpop.f32.mrb[49].mxu0  ;;  %v1791_v43 = vsel %vm1567_vm7, %v3849_v39, -inf }
 0x970   :  { %1792 = vmax.xlane.f32.xlu0 %v1791_v43  ;;  %v1788_v44 = vpop.f32.mrb[50].mxu0 }
 0x971   :  { %v3085_v45 = vpop.f32.mrb[51].mxu0 }
 0x976   :  { %v3853_v46 = vpop.f32.mrb[52].mxu0 }
 0x977   :  { %v3096_v47 = vpop.f32.mrb[53].mxu0  ;;  %v1904_v49 = vsel %vm1567_vm7, %v3853_v46, -inf }
 0x978   :  { %1905 = vmax.xlane.f32.xlu0 %v1904_v49  ;;  %v1901_v50 = vpop.f32.mrb[54].mxu0 }
 0x979   :  { %v3097_v51 = vpop.f32.mrb[55].mxu0 }
 0x97e   :  { %v3857_v52 = vpop.f32.mrb[56].mxu0 }
 0x97f   :  { %v3108_v48 = vpop.f32.mrb[57].mxu0  ;;  %v2015_v54 = vsel %vm1567_vm7, %v3857_v52, -inf }
 0x980   :  { %2016 = vmax.xlane.f32.xlu1 %v2015_v54  ;;  %v2012_v53 = vpop.f32.mrb[58].mxu0 }
 0x981   :  { %v3109_v55 = vpop.f32.mrb[59].mxu0 }
 0x983   :  { %v1570_v5 = vpop.xlane.xlu0 %1569 }
 0x984   :  { %v1571_v6 = vsub.f32 %v1561_v29, %v1570_v5 }
 0x986   :  { %v1572_v56 = vmul.f32 1.442695, %v1571_v6  ;;  %v3861_v57 = vpop.f32.mrb[60].mxu0 }
 0x987   :  { %v3120_v58 = vpop.f32.mrb[61].mxu0  ;;  %v2124_v59 = vsel %vm1567_vm7, %v3861_v57, -inf }
 0x988   :  { %3248 = vpow2.f32 %v1572_v56  ;;  %2125 = vmax.xlane.f32.xlu0 %v2124_v59  ;;  %v2121_v60 = vpop.f32.mrb[62].mxu0 }
 0x989   :  { %v3121_v61 = vpop.f32.mrb[63].mxu0 }
 0x98e   :  { %v3865_v62 = vpop.f32.mrb[64].mxu0 }
 0x98f   :  { %v3132_v63 = vpop.f32.mrb[65].mxu0  ;;  %v2238_v1 = vsel %vm1567_vm7, %v3865_v62, -inf }
 0x990   :  { %2239 = vmax.xlane.f32.xlu1 %v2238_v1  ;;  %v2235_v2 = vpop.f32.mrb[66].mxu0 }
 0x991   :  { %v3133_v3 = vpop.f32.mrb[67].mxu0 }
 0x992   :  { %v3249_v7 = vpop.eup %3248 }
 0x993   :  { %v1574_v8 = vsel %vm1567_vm7, %v3249_v7, 0.0 }
 0x994   :  { %1575 = vadd.xlane.f32.xlu1 %v1574_v8 }
 0x996   :  { %v3870_v10 = vpop.f32.mrb[68].mxu0 }
 0x997   :  { %v3144_v13 = vpop.f32.mrb[69].mxu0  ;;  %v2351_v12 = vsel %vm1567_vm7, %v3870_v10, -inf }
 0x998   :  { %2352 = vmax.xlane.f32.xlu0 %v2351_v12  ;;  %v2348_v14 = vpop.f32.mrb[70].mxu0 }
 0x999   :  { %v3145_v17 = vpop.f32.mrb[71].mxu0 }
 0x9f5   :  { %v1679_v24 = vpop.xlane.xlu1 %1678 }
 0x9f6   :  { %v1680_v25 = vsub.f32 %v3845_v34, %v1679_v24 }
 0x9f8   :  { %v1681_v26 = vmul.f32 1.442695, %v1680_v25 }
 0x9fa   :  { %3250 = vpow2.f32 %v1681_v26 }
 0x9fd   :  { %v1793_v27 = vpop.xlane.xlu0 %1792 }
 0x9fe   :  { %v1794_v28 = vsub.f32 %v3849_v39, %v1793_v27 }
 0xa00   :  { %v1795_v29 = vmul.f32 1.442695, %v1794_v28 }
 0xa02   :  { %3252 = vpow2.f32 %v1795_v29 }
 0xa04   :  { %v3251_v30 = vpop.eup %3250 }
 0xa05   :  { %v1906_v31 = vpop.xlane.xlu0 %1905  ;;  %v1683_v32 = vsel %vm1567_vm7, %v3251_v30, 0.0 }
 0xa06   :  { %v1907_v33 = vsub.f32 %v3853_v46, %v1906_v31  ;;  %1684 = vadd.xlane.f32.xlu0 %v1683_v32 }
 0xa08   :  { %v1908_v35 = vmul.f32 1.442695, %v1907_v33 }
 0xa0a   :  { %3254 = vpow2.f32 %v1908_v35 }
 0xa0c   :  { %v3884_v36 = vpop.eup %3252 }
 0xa0d   :  { %v1797_v34 = vsel %vm1567_vm7, %v3884_v36, 0.0  ;;  %v2017_v39 = vpop.xlane.xlu1 %2016 }
 0xa0e   :  { %1798 = vadd.xlane.f32.xlu1 %v1797_v34  ;;  %v2018_v47 = vsub.f32 %v3857_v52, %v2017_v39 }
 0xa10   :  { %v2019_v51 = vmul.f32 1.442695, %v2018_v47 }
 0xa14   :  { %v3888_v37 = vpop.eup %3254 }
 0xa15   :  { %v1910_v38 = vsel %vm1567_vm7, %v3888_v37, 0.0  ;;  %v2126_v49 = vpop.xlane.xlu0 %2125 }
 0xa16   :  { %1911 = vadd.xlane.f32.xlu0 %v1910_v38  ;;  %v2127_v50 = vsub.f32 %v3861_v57, %v2126_v49 }
 0xa18   :  { %v2128_v53 = vmul.f32 1.442695, %v2127_v50 }
 0xa1d   :  { %v2240_v40 = vpop.xlane.xlu1 %2239 }
 0xa1e   :  { %v2241_v48 = vsub.f32 %v3865_v62, %v2240_v40 }
 0xa1f   :  { %1803 = vrot.lane.b32.xlu1 %v1580_v23, %s3294_s0 }
 0xa20   :  { %v2242_v55 = vmul.f32 1.442695, %v2241_v48 }
 0xa21   :  { %v1576_v43 = vpop.xlane.xlu1 %1575 }
 0xa22   :  { %3256 = vrcp.f32 %v1576_v43 }
 0xa23   :  { %1916 = vrot.lane.b32.xlu1 %v1580_v23, %s4110_s11  ;;  %3258 = vpow2.f32 %v2019_v51 }
 0xa24   :  { %3260 = vpow2.f32 %v2128_v53 }
 0xa25   :  { %v2353_v54 = vpop.xlane.xlu0 %2352  ;;  %3262 = vpow2.f32 %v2242_v55 }
 0xa26   :  { %v2354_v5 = vsub.f32 %v3870_v10, %v2353_v54 }
 0xa28   :  { %v2355_v52 = vmul.f32 1.442695, %v2354_v5 }
 0xa2a   :  { %3264 = vpow2.f32 %v2355_v52 }
 0xa2c   :  { %1690 = vrot.lane.b32.xlu0 %v1580_v23, %s3291_s3  ;;  %v3257_v44 = vpop.eup %3256 }
 0xa2d   :  { %v1578_v45 = vmul.f32 %v3257_v44, %v3249_v7  ;;  %v3259_v6 = vpop.eup %3258 }
 0xa2e   :  { %v3261_v56 = vpop.eup %3260  ;;  %v2021_v58 = vsel %vm1567_vm7, %v3259_v6, 0.0 }
 0xa2f   :  { %v1579_v46 = vpack.c.bf16 %v1578_v45, %v1578_v45  ;;  %v3903_v59 = vpop.eup %3262  ;;  %v2130_v57 = vsel %vm1567_vm7, %v3261_v56, 0.0 }
 0xa30   :  { %v2244_v60 = vsel %vm1567_vm7, %v3903_v59, 0.0 }
 0xa31   :  { %3065 = vmatmul.mubr.msk.bf16.vlgmr.msra.gmra.mrb[48].mxu1 %vm1567_vm7, %v1579_v46 }
 0xa32   :  { %3076 = vmatprep.mubr.msk.bf16.mxu1 %vm3289_vm0, %v3288_v0 }
 0xa34   :  { %v3908_v61 = vpop.eup %3264 }
 0xa35   :  { %v2357_v62 = vsel %vm1567_vm7, %v3908_v61, 0.0 }
 0xa47   :  { %2022 = vadd.xlane.f32.xlu1 %v2021_v58 }
 0xa4b   :  { %2131 = vadd.xlane.f32.xlu1 %v2130_v57  ;;  %2245 = vadd.xlane.f32.xlu0 %v2244_v60  ;;  %v3204_v60 = vld [vmem:[%s4056_s16] sm:$0xff]  }
 0xa4c   :  { %3153 = vmatpush3.bf16.msra.mxu0 %v3204_v60  ;;  %v2805_v60 = vld [vmem:[%s4062_s19] ss:$0 sm:$0xff] }
 0xa4d   :  { %3154 = vmatprep.subr.bf16.mxu0 %v3288_v0 }
 0xa4f   :  { %2358 = vadd.xlane.f32.xlu1 %v2357_v62 }
 0xa60   :  { %2250 = vrot.lane.b32.xlu1 %v3877_v22, %s3294_s0  ;;  %s4113_s0 = smov 24  }
 0xa61   :  { %2137 = vrot.lane.b32.xlu0 %v3877_v22, %s3291_s3  ;;  %s4112_s3 = smov 16  }
 0xa65   :  { %2363 = vrot.lane.b32.xlu0 %v3877_v22, %s4110_s11 }
 0xa93   :  { %v1685_v63 = vpop.xlane.xlu0 %1684 }
 0xa94   :  { %3266 = vrcp.f32 %v1685_v63 }
 0xa9b   :  { %v1799_v1 = vpop.xlane.xlu1 %1798 }
 0xa9c   :  { %3268 = vrcp.f32 %v1799_v1 }
 0xa9e   :  { %v3267_v2 = vpop.eup %3266 }
 0xa9f   :  { %v1687_v7 = vmul.f32 %v3267_v2, %v3251_v30  ;;  %v1804_v11 = vpop.permute.xlu1 %1803 }
 0xaa1   :  { %v1688_v4 = vpack.c.bf16 %v1687_v7, %v1687_v7 }
 0xaa3   :  { %v1912_v3 = vpop.xlane.xlu0 %1911  ;;  %v1917_v14 = vpop.permute.xlu1 %1916 }
 0xaa4   :  { %3270 = vrcp.f32 %v1912_v3 }
 0xaa6   :  { %v3269_v10 = vpop.eup %3268 }
 0xaa7   :  { %v1691_v8 = vpop.permute.xlu0 %1690  ;;  %v1801_v13 = vmul.f32 %v3269_v10, %v3884_v36 }
 0xaa8   :  { %3075 = vmatpush3.bf16.msra.mxu1 %v1691_v8 }
 0xaa9   :  { %3086 = vmatprep.subr.bf16.mxu1 %v3288_v0  ;;  %v1802_v12 = vpack.c.bf16 %v1801_v13, %v1801_v13 }
 0xaab   :  { %3077 = vmatmul.mubr.msk.bf16.vlgmr.msra.gmra.mrb[52].mxu1 %vm1567_vm7, %v1688_v4 }
 0xaac   :  { %3087 = vmatpush3.bf16.msra.mxu1 %v1804_v11  ;;  %3088 = vmatprep.mubr.msk.bf16.mxu1 %vm3289_vm0, %v3288_v0 }
 0xaad   :  { %3098 = vmatprep.subr.bf16.mxu1 %v3288_v0 }
 0xaae   :  { %v3271_v9 = vpop.eup %3270 }
 0xaaf   :  { %v1914_v15 = vmul.f32 %v3271_v9, %v3888_v37 }
 0xab1   :  { %v1915_v16 = vpack.c.bf16 %v1914_v15, %v1914_v15 }
 0xab3   :  { %3089 = vmatmul.mubr.msk.bf16.vlgmr.msra.gmra.mrb[56].mxu1 %vm1567_vm7, %v1802_v12 }
 0xab4   :  { %3099 = vmatpush3.bf16.msra.mxu1 %v1917_v14  ;;  %3100 = vmatprep.mubr.msk.bf16.mxu1 %vm3289_vm0, %v3288_v0 }
 0xab5   :  { %3110 = vmatprep.subr.bf16.mxu1 %v3288_v0 }
 0xabb   :  { %3101 = vmatmul.mubr.msk.bf16.vlgmr.msra.gmra.mrb[60].mxu1 %vm1567_vm7, %v1915_v16 }
 0xabc   :  { %3111 = vmatpush3.bf16.msra.mxu1 %v3877_v22  ;;  %3112 = vmatprep.mubr.msk.bf16.mxu1 %vm3289_vm0, %v3288_v0 }
 0xabd   :  { %3122 = vmatprep.subr.bf16.mxu1 %v3288_v0 }
 0xad4   :  { %v2023_v17 = vpop.xlane.xlu1 %2022 }
 0xad5   :  { %3272 = vrcp.f32 %v2023_v17 }
 0xad8   :  { %v2132_v18 = vpop.xlane.xlu1 %2131  ;;  %v2246_v19 = vpop.xlane.xlu0 %2245 }
 0xad9   :  { %3274 = vrcp.f32 %v2132_v18 }
 0xada   :  { %3276 = vrcp.f32 %v2246_v19  ;;  %v2802_v19 = vld [vmem:[%s4057_s17] ss:$0 sm:$0xff] }
 0xadc   :  { %v2138_v25 = vpop.permute.xlu0 %2137  ;;  %v2359_v26 = vpop.xlane.xlu1 %2358 }
 0xadd   :  { %3278 = vrcp.f32 %v2359_v26 }
 0xadf   :  { %v3273_v20 = vpop.eup %3272 }
 0xae0   :  { %v2025_v21 = vmul.f32 %v3273_v20, %v3259_v6  ;;  %v2251_v29 = vpop.permute.xlu1 %2250  ;;  %v2364_v33 = vpop.permute.xlu0 %2363 }
 0xae2   :  { %v2026_v23 = vpack.c.bf16 %v2025_v21, %v2025_v21 }
 0xae3   :  { %v3275_v24 = vpop.eup %3274 }
 0xae4   :  { %3113 = vmatmul.mubr.msk.bf16.vlgmr.msra.gmra.mrb[64].mxu1 %vm1567_vm7, %v2026_v23  ;;  %v2134_v22 = vmul.f32 %v3275_v24, %v3261_v56  ;;  %v3277_v28 = vpop.eup %3276 }
 0xae5   :  { %3123 = vmatpush3.bf16.msra.mxu1 %v2138_v25  ;;  %3124 = vmatprep.mubr.msk.bf16.mxu1 %vm3289_vm0, %v3288_v0  ;;  %v2248_v30 = vmul.f32 %v3277_v28, %v3903_v59 }
 0xae6   :  { %3134 = vmatprep.subr.bf16.mxu1 %v3288_v0  ;;  %v2135_v27 = vpack.c.bf16 %v2134_v22, %v2134_v22 }
 0xae7   :  { %v2249_v31 = vpack.c.bf16 %v2248_v30, %v2248_v30  ;;  %v3279_v32 = vpop.eup %3278 }
 0xae8   :  { %v2361_v35 = vmul.f32 %v3279_v32, %v3908_v61  ;;  %v3205_v61 = vld [vmem:[%s4056_s16 + $0x8] sm:$0xff]  }
 0xae9   :  { %3155 = vmatpush3.bf16.msra.mxu0 %v3205_v61 }
 0xaea   :  { %v2362_v36 = vpack.c.bf16 %v2361_v35, %v2361_v35  ;;  %3168 = vmatprep.subr.bf16.mxu0 %v3288_v0 }
 0xaec   :  { %3125 = vmatmul.mubr.msk.bf16.vlgmr.msra.gmra.mrb[68].mxu1 %vm1567_vm7, %v2135_v27 }
 0xaed   :  { %3135 = vmatpush3.bf16.msra.mxu1 %v2251_v29  ;;  %3136 = vmatprep.mubr.msk.bf16.mxu1 %vm3289_vm0, %v3288_v0 }
 0xaee   :  { %3146 = vmatprep.subr.bf16.mxu1 %v3288_v0 }
 0xaf4   :  { %3137 = vmatmul.mubr.msk.bf16.vlgmr.msra.gmra.mrb[72].mxu1 %vm1567_vm7, %v2249_v31 }
 0xaf5   :  { %3147 = vmatpush3.bf16.msra.mxu1 %v2364_v33  ;;  %3148 = vmatprep.mubr.msk.bf16.mxu1 %vm3289_vm0, %v3288_v0 }
 0xaf6   :  { %3160 = vmatprep.subr.bf16.mxu1 %v3288_v0 }
 0xafc   :  { %3149 = vmatmul.mubr.msk.bf16.vlgmr.msra.gmra.mrb[76].mxu1 %vm1567_vm7, %v2362_v36 }
 0xafd   :  { %3164 = vmatprep.mubr.msk.bf16.mxu1 %vm3289_vm0, %v3288_v0 }
 0xb04   :  { %v1618_v34 = vpop.f32.mrb[48].mxu1 }
 0xb05   :  { %1624 = vst.msk [vmem:[#allocation2] sm:$0xff] %vm248_vm2, %v1618_v34  ;;  %v3066_v37 = vpop.f32.mrb[49].mxu1 }
 0xb06   :  { %v1621_v38 = vpop.f32.mrb[50].mxu1  ;;  %v3206_v37 = vld [vmem:[%s4058_s18] sm:$0xff]  }
 0xb07   :  { %v3067_v39 = vpop.f32.mrb[51].mxu1  ;;  %3161 = vmatpush3.bf16.msra.mxu1 %v3206_v37  ;;  %v3207_v38 = vld [vmem:[%s4058_s18 + $0x8] sm:$0xff]   ;;  %v2816_v37 = vld [vmem:[%s4065_s27] ss:$0 sm:$0xff] }
 0xb08   :  { %3162 = vmatprep.subr.bf16.mxu1 %v3288_v0  ;;  %v3208_v39 = vld [vmem:[%s4059_s20] sm:$0xff]  }
 0xb0b   :  { %3163 = vmatpush3.bf16.msra.mxu1 %v3207_v38 }
 0xb7e   :  { %v1730_v40 = vpop.f32.mrb[52].mxu1 }
 0xb7f   :  { %1737 = vrot.lane.b32.xlu0 %v1730_v40, %s4111_s15  ;;  %v3078_v43 = vpop.f32.mrb[53].mxu1  ;;  %v3209_v40 = vld [vmem:[%s4059_s20 + $0x8] sm:$0xff]  }
 0xb80   :  { %v1733_v44 = vpop.f32.mrb[54].mxu1 }
 0xb81   :  { %v3079_v45 = vpop.f32.mrb[55].mxu1 }
 0xb86   :  { %v1843_v46 = vpop.f32.mrb[56].mxu1 }
 0xb87   :  { %1850 = vrot.lane.b32.xlu0 %v1843_v46, %s4112_s3  ;;  %v3090_v47 = vpop.f32.mrb[57].mxu1 }
 0xb88   :  { %v1846_v49 = vpop.f32.mrb[58].mxu1 }
 0xb89   :  { %v3091_v50 = vpop.f32.mrb[59].mxu1 }
 0xb8e   :  { %v1956_v51 = vpop.f32.mrb[60].mxu1 }
 0xb8f   :  { %1963 = vrot.lane.b32.xlu0 %v1956_v51, %s4113_s0  ;;  %v3102_v48 = vpop.f32.mrb[61].mxu1 }
 0xb90   :  { %v1959_v54 = vpop.f32.mrb[62].mxu1  ;;  %v2803_v48 = vld [vmem:[%s4060_s24] ss:$0 sm:$0xff] }
 0xb91   :  { %v3103_v53 = vpop.f32.mrb[63].mxu1 }
 0xbb7   :  { %v2065_v55 = vpop.f32.mrb[64].mxu1 }
 0xbb8   :  { %2071 = vst.msk [vmem:[#allocation2 + $0x8] sm:$0xff] %vm248_vm2, %v2065_v55  ;;  %v3114_v5 = vpop.f32.mrb[65].mxu1 }
 0xbb9   :  { %v2068_v52 = vpop.f32.mrb[66].mxu1  ;;  %v2804_v5 = vld [vmem:[%s4061_s25] ss:$0 sm:$0xff] }
 0xbba   :  { %v3115_v6 = vpop.f32.mrb[67].mxu1 }
 0xbbf   :  { %v2177_v56 = vpop.f32.mrb[68].mxu1 }
 0xbc0   :  { %2184 = vrot.lane.b32.xlu1 %v2177_v56, %s4111_s15  ;;  %v3126_v58 = vpop.f32.mrb[69].mxu1 }
 0xbc1   :  { %v2180_v59 = vpop.f32.mrb[70].mxu1 }
 0xbc2   :  { %v3127_v57 = vpop.f32.mrb[71].mxu1  ;;  %v3210_v59 = vld [vmem:[%s4059_s20 + $0x10] sm:$0xff]  }
 0xbc3   :  { %v3211_v57 = vld [vmem:[%s4059_s20 + $0x18] sm:$0xff]  }
 0xbc7   :  { %v2290_v62 = vpop.f32.mrb[72].mxu1 }
 0xbc8   :  { %2297 = vrot.lane.b32.xlu1 %v2290_v62, %s4112_s3  ;;  %v3138_v63 = vpop.f32.mrb[73].mxu1 }
 0xbc9   :  { %v2293_v1 = vpop.f32.mrb[74].mxu1 }
 0xbca   :  { %v3139_v2 = vpop.f32.mrb[75].mxu1 }
 0xbcf   :  { %v2403_v3 = vpop.f32.mrb[76].mxu1 }
 0xbd0   :  { %2410 = vrot.lane.b32.xlu1 %v2403_v3, %s4113_s0  ;;  %v3150_v7 = vpop.f32.mrb[77].mxu1 }
 0xbd1   :  { %v2406_v8 = vpop.f32.mrb[78].mxu1 }
 0xbd2   :  { %v3151_v4 = vpop.f32.mrb[79].mxu1 }
 0xbf1   :  { %v1738_v10 = vpop.permute.xlu0 %1737 }
 0xbf2   :  { %1740 = vst.msk [vmem:[#allocation2] sm:$0xff] %vm472_vm4, %v1738_v10 }
 0xbf9   :  { %v1851_v11 = vpop.permute.xlu0 %1850 }
 0xbfa   :  { %1853 = vst.msk [vmem:[#allocation2] sm:$0xff] %vm588_vm5, %v1851_v11 }
 0xc01   :  { %v1964_v13 = vpop.permute.xlu0 %1963 }
 0xc02   :  { %1966 = vst.msk [vmem:[#allocation2] sm:$0xff] %vm704_vm6, %v1964_v13 }
 0xc09   :  { %v2414_v15 = vld [vmem:[#allocation2] sm:$0xff] }
 0xc32   :  { %v2185_v12 = vpop.permute.xlu1 %2184 }
 0xc33   :  { %2187 = vst.msk [vmem:[#allocation2 + $0x8] sm:$0xff] %vm472_vm4, %v2185_v12 }
 0xc3a   :  { %v2298_v9 = vpop.permute.xlu1 %2297 }
 0xc3b   :  { %2300 = vst.msk [vmem:[#allocation2 + $0x8] sm:$0xff] %vm588_vm5, %v2298_v9 }
 0xc42   :  { %v2411_v14 = vpop.permute.xlu1 %2410 }
 0xc43   :  { %2413 = vst.msk [vmem:[#allocation2 + $0x8] sm:$0xff] %vm704_vm6, %v2411_v14 }
 0xc4a   :  { %v2415_v16 = vld [vmem:[#allocation2 + $0x8] sm:$0xff] }
 0xc4b   :  { %v2416_v17 = vpack.c.bf16 %v2415_v16, %v2414_v15 }
 0xc4d   :  { %3157 = vmatmul.mubr.msk.bf16.vlgmr.msra.gmra.mrb[72].mxu0 %vm128_vm1, %v2416_v17 }
 0xc4e   :  { %3176 = vmatprep.mubr.msk.bf16.mxu0 %vm3289_vm0, %v3288_v0  ;;  %3169 = vmatpush3.bf16.msra.mxu0 %v3208_v39 }
 0xc4f   :  { %3170 = vmatprep.subr.bf16.mxu0 %v3288_v0 }
 0xc52   :  { %3171 = vmatpush3.bf16.msra.mxu0 %v3209_v40 }
 0xc53   :  { %3172 = vmatprep.subr.bf16.mxu0 %v3288_v0 }
 0xc56   :  { %3173 = vmatpush3.bf16.msra.mxu0 %v3210_v59 }
 0xc57   :  { %3174 = vmatprep.subr.bf16.mxu0 %v3288_v0  ;;  %v2809_v0 = vld [vmem:[%s4063_s21] ss:$0 sm:$0xff] }
 0xc5a   :  { %3175 = vmatpush3.bf16.msra.mxu0 %v3211_v57 }
 0xd20   :  { %v2470_v18 = vpop.f32.mrb[72].mxu0 }
 0xd21   :  { %v2477_v20 = vadd.f32 %v2470_v18, %v3756_v41  ;;  %v3158_v21 = vpop.f32.mrb[73].mxu0 }
 0xd22   :  { %v2473_v23 = vpop.f32.mrb[74].mxu0 }
 0xd23   :  { %v2478_v24 = vadd.f32 %v2473_v23, %v3758_v42  ;;  %v3159_v25 = vpop.f32.mrb[75].mxu0  ;;  %v2486_v22 = vadd.f32 %v2802_v19, %v2477_v20 }
 0xd25   :  { %v2488_v26 = vsel %vm128_vm1, %v2486_v22, 0.0  ;;  %v2487_v27 = vadd.f32 %v2802_v19, %v2478_v24 }
 0xd26   :  { %2489 = vadd.xlane.f32.xlu0 %v2488_v26 }
 0xd27   :  { %v2491_v28 = vsel %vm128_vm1, %v2487_v27, 0.0 }
 0xd28   :  { %2492 = vadd.xlane.f32.xlu1 %v2491_v28 }
 0xdb3   :  { %v2490_v29 = vpop.xlane.xlu0 %2489 }
 0xdb4   :  { %v2494_v30 = vmul.f32 0.03125, %v2490_v29 }
 0xdb5   :  { %v2493_v31 = vpop.xlane.xlu1 %2492 }
 0xdb6   :  { %v2496_v32 = vsub.f32 %v2486_v22, %v2494_v30  ;;  %v2495_v33 = vmul.f32 0.03125, %v2493_v31 }
 0xdb8   :  { %v2497_v35 = vsub.f32 %v2487_v27, %v2495_v33  ;;  %v2498_v41 = vmul.f32 %v2496_v32, %v2496_v32 }
 0xdba   :  { %v2500_v36 = vsel %vm128_vm1, %v2498_v41, 0.0  ;;  %v2499_v34 = vmul.f32 %v2497_v35, %v2497_v35 }
 0xdbb   :  { %2501 = vadd.xlane.f32.xlu0 %v2500_v36  ;;  %v2815_v36 = vld [vmem:[%s4064_s26] ss:$0 sm:$0xff] }
 0xdbc   :  { %v2503_v42 = vsel %vm128_vm1, %v2499_v34, 0.0 }
 0xdbf   :  { %2504 = vadd.xlane.f32.xlu0 %v2503_v42 }
 0xe48   :  { %v2502_v43 = vpop.xlane.xlu0 %2501 }
 0xe49   :  { %v2506_v44 = vmul.f32 0.03125, %v2502_v43 }
 0xe4b   :  { %v2508_v45 = vadd.f32 1e-05, %v2506_v44 }
 0xe4c   :  { %v2505_v46 = vpop.xlane.xlu0 %2504 }
 0xe4d   :  { %3280 = vrsqrt.f32 %v2508_v45  ;;  %v2507_v47 = vmul.f32 0.03125, %v2505_v46 }
 0xe4f   :  { %v2509_v49 = vadd.f32 1e-05, %v2507_v47 }
 0xe51   :  { %3282 = vrsqrt.f32 %v2509_v49 }
 0xe57   :  { %v3281_v50 = vpop.eup %3280 }
 0xe58   :  { %v2512_v51 = vmul.f32 %v3281_v50, %v2496_v32 }
 0xe5a   :  { %v2521_v53 = vmul.f32 %v2803_v48, %v2512_v51 }
 0xe5b   :  { %v3283_v54 = vpop.eup %3282 }
 0xe5c   :  { %v2513_v55 = vmul.f32 %v3283_v54, %v2497_v35  ;;  %v2530_v6 = vadd.f32 %v2804_v5, %v2521_v53 }
 0xe5e   :  { %v2522_v52 = vmul.f32 %v2803_v48, %v2513_v55 }
 0xe60   :  { %v2531_v56 = vadd.f32 %v2804_v5, %v2522_v52 }
 0xe62   :  { %v2532_v58 = vpack.c.bf16 %v2531_v56, %v2530_v6 }
 0xe64   :  { %3165 = vmatmul.mubr.msk.bf16.vlgmr.msra.gmra.mrb[80].mxu1 %vm128_vm1, %v2532_v58 }
 0xf37   :  { %v2593_v61 = vpop.f32.mrb[80].mxu1 }
 0xf38   :  { %v2594_v62 = vadd.f32 %v2805_v60, %v2593_v61  ;;  %v3166_v63 = vpop.f32.mrb[81].mxu1 }
 0xf39   :  { %v2596_v1 = vpop.f32.mrb[82].mxu1 }
 0xf3a   :  { %v2597_v2 = vadd.f32 %v2805_v60, %v2596_v1  ;;  %v3167_v3 = vpop.f32.mrb[83].mxu1  ;;  %v2600_v7 = vmax.f32 %v2594_v62, 0.0 }
 0xf3c   :  { %v2601_v8 = vmax.f32 %v2597_v2, 0.0 }
 0xf3e   :  { %v2602_v4 = vpack.c.bf16 %v2601_v8, %v2600_v7 }
 0xf40   :  { %3177 = vmatmul.mubr.msk.bf16.vlgmr.msra.gmra.mrb[76].mxu0 %vm2642_vm8, %v2602_v4 }
0x1013   :  { %v2680_v10 = vpop.f32.mrb[76].mxu0 }
0x1014   :  { %v2681_v11 = vadd.f32 %v2809_v0, %v2680_v10  ;;  %v3178_v13 = vpop.f32.mrb[77].mxu0 }
0x1015   :  { %v2683_v12 = vpop.f32.mrb[78].mxu0 }
0x1016   :  { %v2684_v9 = vadd.f32 %v2809_v0, %v2683_v12  ;;  %v3179_v14 = vpop.f32.mrb[79].mxu0  ;;  %v2687_v15 = vadd.f32 %v2681_v11, %v2530_v6 }
0x1018   :  { %v2689_v16 = vsel %vm128_vm1, %v2687_v15, 0.0  ;;  %v2688_v17 = vadd.f32 %v2684_v9, %v2531_v56 }
0x1019   :  { %2690 = vadd.xlane.f32.xlu1 %v2689_v16 }
0x101a   :  { %v2692_v18 = vsel %vm128_vm1, %v2688_v17, 0.0 }
0x101b   :  { %2693 = vadd.xlane.f32.xlu0 %v2692_v18 }
0x10a6   :  { %v2691_v19 = vpop.xlane.xlu1 %2690 }
0x10a7   :  { %v2695_v20 = vmul.f32 0.03125, %v2691_v19 }
0x10a8   :  { %v2694_v21 = vpop.xlane.xlu0 %2693 }
0x10a9   :  { %v2697_v23 = vsub.f32 %v2687_v15, %v2695_v20  ;;  %v2696_v24 = vmul.f32 0.03125, %v2694_v21 }
0x10ab   :  { %v2698_v25 = vsub.f32 %v2688_v17, %v2696_v24  ;;  %v2699_v22 = vmul.f32 %v2697_v23, %v2697_v23 }
0x10ad   :  { %v2701_v26 = vsel %vm128_vm1, %v2699_v22, 0.0  ;;  %v2700_v27 = vmul.f32 %v2698_v25, %v2698_v25 }
0x10ae   :  { %2702 = vadd.xlane.f32.xlu1 %v2701_v26 }
0x10af   :  { %v2704_v28 = vsel %vm128_vm1, %v2700_v27, 0.0 }
0x10b0   :  { %2705 = vadd.xlane.f32.xlu0 %v2704_v28 }
0x113b   :  { %v2703_v29 = vpop.xlane.xlu1 %2702 }
0x113c   :  { %v2707_v30 = vmul.f32 0.03125, %v2703_v29 }
0x113d   :  { %v2706_v31 = vpop.xlane.xlu0 %2705 }
0x113e   :  { %v2709_v32 = vadd.f32 1e-05, %v2707_v30  ;;  %v2708_v33 = vmul.f32 0.03125, %v2706_v31 }
0x1140   :  { %3284 = vrsqrt.f32 %v2709_v32  ;;  %v2710_v35 = vadd.f32 1e-05, %v2708_v33 }
0x1142   :  { %3286 = vrsqrt.f32 %v2710_v35 }
0x114a   :  { %v3285_v41 = vpop.eup %3284 }
0x114b   :  { %v2713_v34 = vmul.f32 %v3285_v41, %v2697_v23 }
0x114c   :  { %v3287_v42 = vpop.eup %3286 }
0x114d   :  { %v2722_v38 = vmul.f32 %v2815_v36, %v2713_v34  ;;  %v2714_v39 = vmul.f32 %v3287_v42, %v2698_v25 }
0x114f   :  { %v2731_v40 = vadd.f32 %v2816_v37, %v2722_v38  ;;  %v2723_v43 = vmul.f32 %v2815_v36, %v2714_v39 }
0x1151   :  { %2733 = vst.msk [vmem:[%s4066_s28] sm:$0xff] %vm128_vm1, %v2731_v40  ;;  %v2732_v44 = vadd.f32 %v2816_v37, %v2723_v43 }
0x1153   :  { %2734 = vst.msk [vmem:[%s4066_s28 + $0x8] sm:$0xff] %vm128_vm1, %v2732_v44 }

</bundles_post_ra>
